<compile_context>
chip_gen: v7x
topology: tpu7x:2x2x1
jax: 0.10.0
libtpu: 0.0.40
codegen_flags: <defaults>
</compile_context>

<pallas_src>
import jax
import jax.numpy as jnp
from jax import lax
from jax.experimental import pallas as pl
from jax.experimental.pallas import tpu as pltpu

INPUT_SIZE = 3
HIDDEN_SIZE = 64
OUTPUT_SIZE = 3
NUM_LAYERS = 2   # two stacked LSTM cells, hard-wired into the kernel body


# -----------------------------------------------------------------------------
# Kernel
# -----------------------------------------------------------------------------
def _weather_lstm_kernel(x_ref,        # (T, B, F)   f32  raw input sequence
                         wspread_ref,  # (F, 8H)     f32  W_ih0ᵀ spread into layer-0 chunks
                         wcombo_ref,   # (2H, 8H)    bf16 fused [W_hh0|0 ; W_ih1|W_hh1]
                         bcombo_ref,   # (1, 8H)     f32  biases in matching chunks
                         wfc_ref,      # (2H, OUT)   f32  [zeros ; W_fcᵀ]
                         bfc_ref,      # (1, OUT)    f32
                         out_ref):     # (B, OUT)    f32
    T, B, F = x_ref.shape
    G8 = wcombo_ref.shape[1]          # 8H; chunk layout [i0 i1 f0 f1 o0 o1 g0 g1]
    H = G8 // 8
    H2 = 2 * H                        # width of one gate pair / of h_b, c_b

    def in_proj(t):
        # x(t) @ W_ih0_spread + b_combo.  F == 3, so three broadcast-mul-adds on
        # the VPU beat a K=3 MXU matmul and stay off the recurrent chain.
        # Refs are re-read here on purpose: pinning these broadcasts across the
        # fully-unrolled loop would pressure the 64-vreg budget (spills hurt
        # more than a few cheap re-broadcasts off the critical path).
        xt = x_ref[t]                                            # (B, F)
        p = bcombo_ref[...]                                      # (1, 8H)
        for j in range(F):
            p = p + xt[:, j:j + 1] * wspread_ref[j:j + 1, :]     # -> (B, 8H)
        return p

    def cell(pre, c_b):
        # pre: (B, 8H) pre-activations.  i/f/o columns were pre-scaled by 0.5
        # so sigmoid(z) == 0.5*tanh(z/2)+0.5 is one contiguous tanh + affine.
        # All slices below are 128-lane aligned.
        t_all = jnp.tanh(pre)
        a = 0.5 * t_all + 0.5
        i_b = a[:, 0:H2]
        f_b = a[:, H2:2 * H2]
        o_b = a[:, 2 * H2:3 * H2]
        g_b = t_all[:, 3 * H2:4 * H2]
        c_new = f_b * c_b + i_b * g_b
        h_new = o_b * jnp.tanh(c_new)
        return h_new, c_new                                      # (B, 2H) each

    def step(h_b, c_b, add):
        # ONE fused MXU issue per time step: [h0(t) | h1(t-1)] @ W_combo.
        # Lanes 0:H of every gate chunk belong to layer 0 (time t+1), lanes
        # H:2H to layer 1 (time t); the two cells are independent.
        combo = jnp.dot(h_b.astype(jnp.bfloat16), wcombo_ref[...],
                        preferred_element_type=jnp.float32) + add
        return cell(combo, c_b)

    # ---- prologue: layer-0 cell at t = 0 (h(-1) = c(-1) = 0) ----------------
    p0 = in_proj(0)
    t0 = jnp.tanh(p0)
    a0 = 0.5 * t0 + 0.5
    ig = a0[:, 0:H2] * t0[:, 3 * H2:4 * H2]            # i*g   (f*c_init == 0)
    lane = lax.broadcasted_iota(jnp.int32, (B, H2), 1)
    c_b = jnp.where(lane < H, ig, 0.0)                 # zero spurious layer-1 half
    h_b = a0[:, 2 * H2:3 * H2] * jnp.tanh(c_b)         # layer-1 half -> o*tanh(0)=0

    # ---- skewed recurrence: T-1 fused steps (fully unrolled, T is static) ----
    for t in range(T - 1):
        h_b, c_b = step(h_b, c_b, in_proj(t + 1))

    # ---- epilogue: final layer-1 cell at t = T-1 (layer-0 half is unused) ----
    h_b, c_b = step(h_b, c_b, bcombo_ref[...])

    # Final Linear.  wfc_ref's first H rows are zero, so the junk layer-0 half
    # of h_b contributes nothing and no lane-offset slice of h is needed.
    out = jnp.dot(h_b, wfc_ref[...],
                  preferred_element_type=jnp.float32) + bfc_ref[...]
    out_ref[...] = out.astype(out_ref.dtype)


# -----------------------------------------------------------------------------
# Parameter construction / one-time preparation
# -----------------------------------------------------------------------------
def init_params(key, input_size=INPUT_SIZE, hidden_size=HIDDEN_SIZE,
                output_size=OUTPUT_SIZE):
    """PyTorch-style uniform(-1/sqrt(H), 1/sqrt(H)) init, PyTorch layouts."""
    H = hidden_size
    bound = 1.0 / float(H) ** 0.5
    keys = jax.random.split(key, 10)
    u = lambda k, shape: jax.random.uniform(k, shape, jnp.float32, -bound, bound)
    return {
        "w_ih0": u(keys[0], (4 * H, input_size)),
        "w_hh0": u(keys[1], (4 * H, H)),
        "b_ih0": u(keys[2], (4 * H,)),
        "b_hh0": u(keys[3], (4 * H,)),
        "w_ih1": u(keys[4], (4 * H, H)),
        "w_hh1": u(keys[5], (4 * H, H)),
        "b_ih1": u(keys[6], (4 * H,)),
        "b_hh1": u(keys[7], (4 * H,)),
        "w_fc": u(keys[8], (output_size, H)),
        "b_fc": u(keys[9], (output_size,)),
    }


def prepare_params(params):
    """One-time weight preparation — keep OFF the per-call path.

    Builds:
      wspread (F, 8H)  : W_ih0ᵀ placed in the layer-0 gate chunks (layer-1 = 0)
      wcombo  (2H, 8H) : fused recurrent weight, rows 0:H <- h0, rows H:2H <- h1,
                         column chunks [i0 i1 f0 f1 o0 o1 g0 g1] (each H wide), bf16
      bcombo  (1, 8H)  : (b_ih + b_hh) per layer in the matching chunks
      wfc     (2H, OUT): [zeros ; W_fcᵀ]  (consumes [h0 | h1] directly)
    i/f/o columns are pre-scaled by 0.5 so the kernel can use
    sigmoid(z) = 0.5*tanh(z/2) + 0.5 as a single contiguous tanh.
    """
    H = params["w_hh0"].shape[1]
    F = params["w_ih0"].shape[1]
    OUT = params["w_fc"].shape[0]
    PT_ORDER = ("i", "f", "g", "o")       # torch.nn.LSTM gate order on the 4H axis
    OUT_ORDER = ("i", "f", "o", "g")      # kernel chunk order (sigmoids contiguous)

    def chunks(w_t):                      # (K, 4H) -> {gate: (K, H)}
        return {g: w_t[:, k * H:(k + 1) * H] for k, g in enumerate(PT_ORDER)}

    wih0 = chunks(params["w_ih0"].T)      # (F, H) each
    whh0 = chunks(params["w_hh0"].T)      # (H, H)
    wih1 = chunks(params["w_ih1"].T)
    whh1 = chunks(params["w_hh1"].T)
    b0 = chunks((params["b_ih0"] + params["b_hh0"]).reshape(1, 4 * H))
    b1 = chunks((params["b_ih1"] + params["b_hh1"]).reshape(1, 4 * H))

    def s(g, w):                          # fold the 0.5 sigmoid pre-scale into i/f/o
        return 0.5 * w if g in ("i", "f", "o") else w

    zH = jnp.zeros((H, H), jnp.float32)
    zF = jnp.zeros((F, H), jnp.float32)

    combo_cols, spread_cols, bias_cols = [], [], []
    for g in OUT_ORDER:
        combo_cols.append(jnp.concatenate([s(g, whh0[g]), zH], axis=0))             # layer-0 chunk
        combo_cols.append(jnp.concatenate([s(g, wih1[g]), s(g, whh1[g])], axis=0))  # layer-1 chunk
        spread_cols += [s(g, wih0[g]), zF]
        bias_cols += [s(g, b0[g]), s(g, b1[g])]

    return {
        "wspread": jnp.concatenate(spread_cols, axis=1),                       # (F, 8H)  f32
        "wcombo": jnp.concatenate(combo_cols, axis=1).astype(jnp.bfloat16),    # (2H, 8H) bf16
        "bcombo": jnp.concatenate(bias_cols, axis=1),                          # (1, 8H)  f32
        "wfc": jnp.concatenate([jnp.zeros((H, OUT), jnp.float32),
                                params["w_fc"].T.astype(jnp.float32)], axis=0),  # (2H, OUT)
        "bfc": params["b_fc"].reshape(1, OUT).astype(jnp.float32),
    }


# -----------------------------------------------------------------------------
# Per-call wrapper
# -----------------------------------------------------------------------------
@jax.jit
def weather_lstm_forward(x, prep):
    """x: (B, T, F) float32, batch_first (like PyTorch). Returns (B, OUTPUT_SIZE)."""
    B, T, F = x.shape
    OUT = prep["bfc"].shape[1]
    x_tm = jnp.transpose(x, (1, 0, 2)).astype(jnp.float32)       # (T, B, F)

    vmem = pl.BlockSpec(memory_space=pltpu.MemorySpace.VMEM)
    # No grid: the whole (tiny) problem is VMEM-resident on one TensorCore.
    # For large B on v7x, add grid=(B//tb,) + dimension_semantics=("parallel",).
    return pl.pallas_call(
        _weather_lstm_kernel,
        out_shape=jax.ShapeDtypeStruct((B, OUT), jnp.float32),
        in_specs=[vmem] * 6,
        out_specs=vmem,
    )(x_tm, prep["wspread"], prep["wcombo"], prep["bcombo"],
      prep["wfc"], prep["bfc"])


# -----------------------------------------------------------------------------
# Pure-JAX reference (torch.nn.LSTM + Linear semantics)
# -----------------------------------------------------------------------------
def _reference_forward(x, params):
    B, T, _ = x.shape
    H = params["w_hh0"].shape[1]

    def lstm_cell(x_t, h, c, w_ih, w_hh, b_ih, b_hh):
        gates = x_t @ w_ih.T + b_ih + h @ w_hh.T + b_hh
        i, f, g, o = jnp.split(gates, 4, axis=-1)
        i, f, o = jax.nn.sigmoid(i), jax.nn.sigmoid(f), jax.nn.sigmoid(o)
        g = jnp.tanh(g)
        c = f * c + i * g
        h = o * jnp.tanh(c)
        return h, c

    h0 = c0 = h1 = c1 = jnp.zeros((B, H), jnp.float32)
    for t in range(T):
        x_t = x[:, t, :]
        h0, c0 = lstm_cell(x_t, h0, c0, params["w_ih0"], params["w_hh0"],
                           params["b_ih0"], params["b_hh0"])
        h1, c1 = lstm_cell(h0, h1, c1, params["w_ih1"], params["w_hh1"],
                           params["b_ih1"], params["b_hh1"])
    return h1 @ params["w_fc"].T + params["b_fc"]


if __name__ == "__main__":
    key = jax.random.PRNGKey(0)
    k_param, k_x = jax.random.split(key)

    B, T = 4, 8
    params = init_params(k_param)
    prep = prepare_params(params)        # one-time; off the per-call path
    x = jax.random.normal(k_x, (B, T, INPUT_SIZE), jnp.float32)

    out = jax.block_until_ready(weather_lstm_forward(x, prep))
    ref = _reference_forward(x, params)

    assert out.shape == (B, OUTPUT_SIZE), out.shape
    max_err = float(jnp.max(jnp.abs(out - ref)))
    # bf16 MXU operands on the recurrent matmul introduce ~1e-3 level noise.
    assert jnp.allclose(out, ref, rtol=1e-2, atol=1e-2), f"max abs err {max_err}"
    print("KERNEL_OK")
</pallas_src>

<mosaic_0001>
module attributes {stable_mosaic.version = 11 : i64} {
  func.func @_weather_lstm_kernel(%arg0: memref<8x4x3xf32, #tpu.memory_space<vmem>>, %arg1: memref<3x512xf32, #tpu.memory_space<vmem>>, %arg2: memref<128x512xbf16, #tpu.memory_space<vmem>>, %arg3: memref<1x512xf32, #tpu.memory_space<vmem>>, %arg4: memref<128x3xf32, #tpu.memory_space<vmem>>, %arg5: memref<1x3xf32, #tpu.memory_space<vmem>>, %arg6: memref<4x3xf32, #tpu.memory_space<vmem>>) attributes {dimension_semantics = [], scalar_prefetch = 0 : i64, scratch_operands = 0 : i64, tpu.core_type = #tpu.core_type<tc>} {
    %c0 = arith.constant 0 : index
    %c0_0 = arith.constant 0 : index
    %c0_1 = arith.constant 0 : index
    %0 = vector.load %arg0[%c0, %c0_0, %c0_1] : memref<8x4x3xf32, #tpu.memory_space<vmem>>, vector<1x4x3xf32>
    %1 = vector.shape_cast %0 : vector<1x4x3xf32> to vector<4x3xf32>
    %c0_2 = arith.constant 0 : index
    %c0_3 = arith.constant 0 : index
    %2 = vector.load %arg3[%c0_2, %c0_3] : memref<1x512xf32, #tpu.memory_space<vmem>>, vector<1x512xf32>
    %3 = vector.extract_strided_slice %1 {offsets = [0, 0], sizes = [4, 1], strides = [1, 1]} : vector<4x3xf32> to vector<4x1xf32>
    %c0_4 = arith.constant 0 : index
    %c0_5 = arith.constant 0 : index
    %4 = vector.load %arg1[%c0_4, %c0_5] : memref<3x512xf32, #tpu.memory_space<vmem>>, vector<1x512xf32>
    %5 = vector.broadcast %3 : vector<4x1xf32> to vector<4x512xf32>
    %6 = vector.broadcast %4 : vector<1x512xf32> to vector<4x512xf32>
    %7 = arith.mulf %5, %6 : vector<4x512xf32>
    %8 = vector.broadcast %2 : vector<1x512xf32> to vector<4x512xf32>
    %9 = arith.addf %8, %7 : vector<4x512xf32>
    %10 = vector.extract_strided_slice %1 {offsets = [0, 1], sizes = [4, 1], strides = [1, 1]} : vector<4x3xf32> to vector<4x1xf32>
    %c1 = arith.constant 1 : index
    %c0_6 = arith.constant 0 : index
    %11 = vector.load %arg1[%c1, %c0_6] : memref<3x512xf32, #tpu.memory_space<vmem>>, vector<1x512xf32>
    %12 = vector.broadcast %10 : vector<4x1xf32> to vector<4x512xf32>
    %13 = vector.broadcast %11 : vector<1x512xf32> to vector<4x512xf32>
    %14 = arith.mulf %12, %13 : vector<4x512xf32>
    %15 = arith.addf %9, %14 : vector<4x512xf32>
    %16 = vector.extract_strided_slice %1 {offsets = [0, 2], sizes = [4, 1], strides = [1, 1]} : vector<4x3xf32> to vector<4x1xf32>
    %c2 = arith.constant 2 : index
    %c0_7 = arith.constant 0 : index
    %17 = vector.load %arg1[%c2, %c0_7] : memref<3x512xf32, #tpu.memory_space<vmem>>, vector<1x512xf32>
    %18 = vector.broadcast %16 : vector<4x1xf32> to vector<4x512xf32>
    %19 = vector.broadcast %17 : vector<1x512xf32> to vector<4x512xf32>
    %20 = arith.mulf %18, %19 : vector<4x512xf32>
    %21 = arith.addf %15, %20 : vector<4x512xf32>
    %22 = math.tanh %21 : vector<4x512xf32>
    %cst = arith.constant 5.000000e-01 : f32
    %23 = vector.broadcast %cst : f32 to vector<4x512xf32>
    %24 = arith.mulf %23, %22 : vector<4x512xf32>
    %cst_8 = arith.constant 5.000000e-01 : f32
    %25 = vector.broadcast %cst_8 : f32 to vector<4x512xf32>
    %26 = arith.addf %24, %25 : vector<4x512xf32>
    %27 = vector.extract_strided_slice %26 {offsets = [0, 0], sizes = [4, 128], strides = [1, 1]} : vector<4x512xf32> to vector<4x128xf32>
    %28 = vector.extract_strided_slice %22 {offsets = [0, 384], sizes = [4, 128], strides = [1, 1]} : vector<4x512xf32> to vector<4x128xf32>
    %29 = arith.mulf %27, %28 : vector<4x128xf32>
    %30 = tpu.iota {dimensions = array<i32: 1>} : vector<4x128xi32>
    %c64_i32 = arith.constant 64 : i32
    %31 = vector.broadcast %c64_i32 : i32 to vector<4x128xi32>
    %32 = arith.cmpi slt, %30, %31 : vector<4x128xi32>
    %cst_9 = arith.constant 0.000000e+00 : f32
    %33 = vector.broadcast %cst_9 : f32 to vector<4x128xf32>
    %34 = arith.select %32, %29, %33 : vector<4x128xi1>, vector<4x128xf32>
    %35 = vector.extract_strided_slice %26 {offsets = [0, 256], sizes = [4, 128], strides = [1, 1]} : vector<4x512xf32> to vector<4x128xf32>
    %36 = math.tanh %34 : vector<4x128xf32>
    %37 = arith.mulf %35, %36 : vector<4x128xf32>
    %c1_10 = arith.constant 1 : index
    %c0_11 = arith.constant 0 : index
    %c0_12 = arith.constant 0 : index
    %38 = vector.load %arg0[%c1_10, %c0_11, %c0_12] : memref<8x4x3xf32, #tpu.memory_space<vmem>>, vector<1x4x3xf32>
    %39 = vector.shape_cast %38 : vector<1x4x3xf32> to vector<4x3xf32>
    %c0_13 = arith.constant 0 : index
    %c0_14 = arith.constant 0 : index
    %40 = vector.load %arg3[%c0_13, %c0_14] : memref<1x512xf32, #tpu.memory_space<vmem>>, vector<1x512xf32>
    %41 = vector.extract_strided_slice %39 {offsets = [0, 0], sizes = [4, 1], strides = [1, 1]} : vector<4x3xf32> to vector<4x1xf32>
    %c0_15 = arith.constant 0 : index
    %c0_16 = arith.constant 0 : index
    %42 = vector.load %arg1[%c0_15, %c0_16] : memref<3x512xf32, #tpu.memory_space<vmem>>, vector<1x512xf32>
    %43 = vector.broadcast %41 : vector<4x1xf32> to vector<4x512xf32>
    %44 = vector.broadcast %42 : vector<1x512xf32> to vector<4x512xf32>
    %45 = arith.mulf %43, %44 : vector<4x512xf32>
    %46 = vector.broadcast %40 : vector<1x512xf32> to vector<4x512xf32>
    %47 = arith.addf %46, %45 : vector<4x512xf32>
    %48 = vector.extract_strided_slice %39 {offsets = [0, 1], sizes = [4, 1], strides = [1, 1]} : vector<4x3xf32> to vector<4x1xf32>
    %c1_17 = arith.constant 1 : index
    %c0_18 = arith.constant 0 : index
    %49 = vector.load %arg1[%c1_17, %c0_18] : memref<3x512xf32, #tpu.memory_space<vmem>>, vector<1x512xf32>
    %50 = vector.broadcast %48 : vector<4x1xf32> to vector<4x512xf32>
    %51 = vector.broadcast %49 : vector<1x512xf32> to vector<4x512xf32>
    %52 = arith.mulf %50, %51 : vector<4x512xf32>
    %53 = arith.addf %47, %52 : vector<4x512xf32>
    %54 = vector.extract_strided_slice %39 {offsets = [0, 2], sizes = [4, 1], strides = [1, 1]} : vector<4x3xf32> to vector<4x1xf32>
    %c2_19 = arith.constant 2 : index
    %c0_20 = arith.constant 0 : index
    %55 = vector.load %arg1[%c2_19, %c0_20] : memref<3x512xf32, #tpu.memory_space<vmem>>, vector<1x512xf32>
    %56 = vector.broadcast %54 : vector<4x1xf32> to vector<4x512xf32>
    %57 = vector.broadcast %55 : vector<1x512xf32> to vector<4x512xf32>
    %58 = arith.mulf %56, %57 : vector<4x512xf32>
    %59 = arith.addf %53, %58 : vector<4x512xf32>
    %60 = arith.truncf %37 : vector<4x128xf32> to vector<4x128xbf16>
    %c0_21 = arith.constant 0 : index
    %c0_22 = arith.constant 0 : index
    %61 = vector.load %arg2[%c0_21, %c0_22] : memref<128x512xbf16, #tpu.memory_space<vmem>>, vector<128x512xbf16>
    %cst_23 = arith.constant dense<0.000000e+00> : vector<4x512xf32>
    %62 = tpu.matmul %60, %61, %cst_23 {dimension_numbers = #tpu.dot_dimension_numbers<[1], [0], [0], [1], [0, 0, 1, 1], [], []>} : vector<4x128xbf16>, vector<128x512xbf16>, vector<4x512xf32> -> vector<4x512xf32>
    %63 = arith.addf %62, %59 : vector<4x512xf32>
    %64 = math.tanh %63 : vector<4x512xf32>
    %cst_24 = arith.constant 5.000000e-01 : f32
    %65 = vector.broadcast %cst_24 : f32 to vector<4x512xf32>
    %66 = arith.mulf %65, %64 : vector<4x512xf32>
    %cst_25 = arith.constant 5.000000e-01 : f32
    %67 = vector.broadcast %cst_25 : f32 to vector<4x512xf32>
    %68 = arith.addf %66, %67 : vector<4x512xf32>
    %69 = vector.extract_strided_slice %68 {offsets = [0, 0], sizes = [4, 128], strides = [1, 1]} : vector<4x512xf32> to vector<4x128xf32>
    %70 = vector.extract_strided_slice %68 {offsets = [0, 128], sizes = [4, 128], strides = [1, 1]} : vector<4x512xf32> to vector<4x128xf32>
    %71 = vector.extract_strided_slice %68 {offsets = [0, 256], sizes = [4, 128], strides = [1, 1]} : vector<4x512xf32> to vector<4x128xf32>
    %72 = vector.extract_strided_slice %64 {offsets = [0, 384], sizes = [4, 128], strides = [1, 1]} : vector<4x512xf32> to vector<4x128xf32>
    %73 = arith.mulf %70, %34 : vector<4x128xf32>
    %74 = arith.mulf %69, %72 : vector<4x128xf32>
    %75 = arith.addf %73, %74 : vector<4x128xf32>
    %76 = math.tanh %75 : vector<4x128xf32>
    %77 = arith.mulf %71, %76 : vector<4x128xf32>
    %c2_26 = arith.constant 2 : index
    %c0_27 = arith.constant 0 : index
    %c0_28 = arith.constant 0 : index
    %78 = vector.load %arg0[%c2_26, %c0_27, %c0_28] : memref<8x4x3xf32, #tpu.memory_space<vmem>>, vector<1x4x3xf32>
    %79 = vector.shape_cast %78 : vector<1x4x3xf32> to vector<4x3xf32>
    %c0_29 = arith.constant 0 : index
    %c0_30 = arith.constant 0 : index
    %80 = vector.load %arg3[%c0_29, %c0_30] : memref<1x512xf32, #tpu.memory_space<vmem>>, vector<1x512xf32>
    %81 = vector.extract_strided_slice %79 {offsets = [0, 0], sizes = [4, 1], strides = [1, 1]} : vector<4x3xf32> to vector<4x1xf32>
    %c0_31 = arith.constant 0 : index
    %c0_32 = arith.constant 0 : index
    %82 = vector.load %arg1[%c0_31, %c0_32] : memref<3x512xf32, #tpu.memory_space<vmem>>, vector<1x512xf32>
    %83 = vector.broadcast %81 : vector<4x1xf32> to vector<4x512xf32>
    %84 = vector.broadcast %82 : vector<1x512xf32> to vector<4x512xf32>
    %85 = arith.mulf %83, %84 : vector<4x512xf32>
    %86 = vector.broadcast %80 : vector<1x512xf32> to vector<4x512xf32>
    %87 = arith.addf %86, %85 : vector<4x512xf32>
    %88 = vector.extract_strided_slice %79 {offsets = [0, 1], sizes = [4, 1], strides = [1, 1]} : vector<4x3xf32> to vector<4x1xf32>
    %c1_33 = arith.constant 1 : index
    %c0_34 = arith.constant 0 : index
    %89 = vector.load %arg1[%c1_33, %c0_34] : memref<3x512xf32, #tpu.memory_space<vmem>>, vector<1x512xf32>
    %90 = vector.broadcast %88 : vector<4x1xf32> to vector<4x512xf32>
    %91 = vector.broadcast %89 : vector<1x512xf32> to vector<4x512xf32>
    %92 = arith.mulf %90, %91 : vector<4x512xf32>
    %93 = arith.addf %87, %92 : vector<4x512xf32>
    %94 = vector.extract_strided_slice %79 {offsets = [0, 2], sizes = [4, 1], strides = [1, 1]} : vector<4x3xf32> to vector<4x1xf32>
    %c2_35 = arith.constant 2 : index
    %c0_36 = arith.constant 0 : index
    %95 = vector.load %arg1[%c2_35, %c0_36] : memref<3x512xf32, #tpu.memory_space<vmem>>, vector<1x512xf32>
    %96 = vector.broadcast %94 : vector<4x1xf32> to vector<4x512xf32>
    %97 = vector.broadcast %95 : vector<1x512xf32> to vector<4x512xf32>
    %98 = arith.mulf %96, %97 : vector<4x512xf32>
    %99 = arith.addf %93, %98 : vector<4x512xf32>
    %100 = arith.truncf %77 : vector<4x128xf32> to vector<4x128xbf16>
    %c0_37 = arith.constant 0 : index
    %c0_38 = arith.constant 0 : index
    %101 = vector.load %arg2[%c0_37, %c0_38] : memref<128x512xbf16, #tpu.memory_space<vmem>>, vector<128x512xbf16>
    %cst_39 = arith.constant dense<0.000000e+00> : vector<4x512xf32>
    %102 = tpu.matmul %100, %101, %cst_39 {dimension_numbers = #tpu.dot_dimension_numbers<[1], [0], [0], [1], [0, 0, 1, 1], [], []>} : vector<4x128xbf16>, vector<128x512xbf16>, vector<4x512xf32> -> vector<4x512xf32>
    %103 = arith.addf %102, %99 : vector<4x512xf32>
    %104 = math.tanh %103 : vector<4x512xf32>
    %cst_40 = arith.constant 5.000000e-01 : f32
    %105 = vector.broadcast %cst_40 : f32 to vector<4x512xf32>
    %106 = arith.mulf %105, %104 : vector<4x512xf32>
    %cst_41 = arith.constant 5.000000e-01 : f32
    %107 = vector.broadcast %cst_41 : f32 to vector<4x512xf32>
    %108 = arith.addf %106, %107 : vector<4x512xf32>
    %109 = vector.extract_strided_slice %108 {offsets = [0, 0], sizes = [4, 128], strides = [1, 1]} : vector<4x512xf32> to vector<4x128xf32>
    %110 = vector.extract_strided_slice %108 {offsets = [0, 128], sizes = [4, 128], strides = [1, 1]} : vector<4x512xf32> to vector<4x128xf32>
    %111 = vector.extract_strided_slice %108 {offsets = [0, 256], sizes = [4, 128], strides = [1, 1]} : vector<4x512xf32> to vector<4x128xf32>
    %112 = vector.extract_strided_slice %104 {offsets = [0, 384], sizes = [4, 128], strides = [1, 1]} : vector<4x512xf32> to vector<4x128xf32>
    %113 = arith.mulf %110, %75 : vector<4x128xf32>
    %114 = arith.mulf %109, %112 : vector<4x128xf32>
    %115 = arith.addf %113, %114 : vector<4x128xf32>
    %116 = math.tanh %115 : vector<4x128xf32>
    %117 = arith.mulf %111, %116 : vector<4x128xf32>
    %c3 = arith.constant 3 : index
    %c0_42 = arith.constant 0 : index
    %c0_43 = arith.constant 0 : index
    %118 = vector.load %arg0[%c3, %c0_42, %c0_43] : memref<8x4x3xf32, #tpu.memory_space<vmem>>, vector<1x4x3xf32>
    %119 = vector.shape_cast %118 : vector<1x4x3xf32> to vector<4x3xf32>
    %c0_44 = arith.constant 0 : index
    %c0_45 = arith.constant 0 : index
    %120 = vector.load %arg3[%c0_44, %c0_45] : memref<1x512xf32, #tpu.memory_space<vmem>>, vector<1x512xf32>
    %121 = vector.extract_strided_slice %119 {offsets = [0, 0], sizes = [4, 1], strides = [1, 1]} : vector<4x3xf32> to vector<4x1xf32>
    %c0_46 = arith.constant 0 : index
    %c0_47 = arith.constant 0 : index
    %122 = vector.load %arg1[%c0_46, %c0_47] : memref<3x512xf32, #tpu.memory_space<vmem>>, vector<1x512xf32>
    %123 = vector.broadcast %121 : vector<4x1xf32> to vector<4x512xf32>
    %124 = vector.broadcast %122 : vector<1x512xf32> to vector<4x512xf32>
    %125 = arith.mulf %123, %124 : vector<4x512xf32>
    %126 = vector.broadcast %120 : vector<1x512xf32> to vector<4x512xf32>
    %127 = arith.addf %126, %125 : vector<4x512xf32>
    %128 = vector.extract_strided_slice %119 {offsets = [0, 1], sizes = [4, 1], strides = [1, 1]} : vector<4x3xf32> to vector<4x1xf32>
    %c1_48 = arith.constant 1 : index
    %c0_49 = arith.constant 0 : index
    %129 = vector.load %arg1[%c1_48, %c0_49] : memref<3x512xf32, #tpu.memory_space<vmem>>, vector<1x512xf32>
    %130 = vector.broadcast %128 : vector<4x1xf32> to vector<4x512xf32>
    %131 = vector.broadcast %129 : vector<1x512xf32> to vector<4x512xf32>
    %132 = arith.mulf %130, %131 : vector<4x512xf32>
    %133 = arith.addf %127, %132 : vector<4x512xf32>
    %134 = vector.extract_strided_slice %119 {offsets = [0, 2], sizes = [4, 1], strides = [1, 1]} : vector<4x3xf32> to vector<4x1xf32>
    %c2_50 = arith.constant 2 : index
    %c0_51 = arith.constant 0 : index
    %135 = vector.load %arg1[%c2_50, %c0_51] : memref<3x512xf32, #tpu.memory_space<vmem>>, vector<1x512xf32>
    %136 = vector.broadcast %134 : vector<4x1xf32> to vector<4x512xf32>
    %137 = vector.broadcast %135 : vector<1x512xf32> to vector<4x512xf32>
    %138 = arith.mulf %136, %137 : vector<4x512xf32>
    %139 = arith.addf %133, %138 : vector<4x512xf32>
    %140 = arith.truncf %117 : vector<4x128xf32> to vector<4x128xbf16>
    %c0_52 = arith.constant 0 : index
    %c0_53 = arith.constant 0 : index
    %141 = vector.load %arg2[%c0_52, %c0_53] : memref<128x512xbf16, #tpu.memory_space<vmem>>, vector<128x512xbf16>
    %cst_54 = arith.constant dense<0.000000e+00> : vector<4x512xf32>
    %142 = tpu.matmul %140, %141, %cst_54 {dimension_numbers = #tpu.dot_dimension_numbers<[1], [0], [0], [1], [0, 0, 1, 1], [], []>} : vector<4x128xbf16>, vector<128x512xbf16>, vector<4x512xf32> -> vector<4x512xf32>
    %143 = arith.addf %142, %139 : vector<4x512xf32>
    %144 = math.tanh %143 : vector<4x512xf32>
    %cst_55 = arith.constant 5.000000e-01 : f32
    %145 = vector.broadcast %cst_55 : f32 to vector<4x512xf32>
    %146 = arith.mulf %145, %144 : vector<4x512xf32>
    %cst_56 = arith.constant 5.000000e-01 : f32
    %147 = vector.broadcast %cst_56 : f32 to vector<4x512xf32>
    %148 = arith.addf %146, %147 : vector<4x512xf32>
    %149 = vector.extract_strided_slice %148 {offsets = [0, 0], sizes = [4, 128], strides = [1, 1]} : vector<4x512xf32> to vector<4x128xf32>
    %150 = vector.extract_strided_slice %148 {offsets = [0, 128], sizes = [4, 128], strides = [1, 1]} : vector<4x512xf32> to vector<4x128xf32>
    %151 = vector.extract_strided_slice %148 {offsets = [0, 256], sizes = [4, 128], strides = [1, 1]} : vector<4x512xf32> to vector<4x128xf32>
    %152 = vector.extract_strided_slice %144 {offsets = [0, 384], sizes = [4, 128], strides = [1, 1]} : vector<4x512xf32> to vector<4x128xf32>
    %153 = arith.mulf %150, %115 : vector<4x128xf32>
    %154 = arith.mulf %149, %152 : vector<4x128xf32>
    %155 = arith.addf %153, %154 : vector<4x128xf32>
    %156 = math.tanh %155 : vector<4x128xf32>
    %157 = arith.mulf %151, %156 : vector<4x128xf32>
    %c4 = arith.constant 4 : index
    %c0_57 = arith.constant 0 : index
    %c0_58 = arith.constant 0 : index
    %158 = vector.load %arg0[%c4, %c0_57, %c0_58] : memref<8x4x3xf32, #tpu.memory_space<vmem>>, vector<1x4x3xf32>
    %159 = vector.shape_cast %158 : vector<1x4x3xf32> to vector<4x3xf32>
    %c0_59 = arith.constant 0 : index
    %c0_60 = arith.constant 0 : index
    %160 = vector.load %arg3[%c0_59, %c0_60] : memref<1x512xf32, #tpu.memory_space<vmem>>, vector<1x512xf32>
    %161 = vector.extract_strided_slice %159 {offsets = [0, 0], sizes = [4, 1], strides = [1, 1]} : vector<4x3xf32> to vector<4x1xf32>
    %c0_61 = arith.constant 0 : index
    %c0_62 = arith.constant 0 : index
    %162 = vector.load %arg1[%c0_61, %c0_62] : memref<3x512xf32, #tpu.memory_space<vmem>>, vector<1x512xf32>
    %163 = vector.broadcast %161 : vector<4x1xf32> to vector<4x512xf32>
    %164 = vector.broadcast %162 : vector<1x512xf32> to vector<4x512xf32>
    %165 = arith.mulf %163, %164 : vector<4x512xf32>
    %166 = vector.broadcast %160 : vector<1x512xf32> to vector<4x512xf32>
    %167 = arith.addf %166, %165 : vector<4x512xf32>
    %168 = vector.extract_strided_slice %159 {offsets = [0, 1], sizes = [4, 1], strides = [1, 1]} : vector<4x3xf32> to vector<4x1xf32>
    %c1_63 = arith.constant 1 : index
    %c0_64 = arith.constant 0 : index
    %169 = vector.load %arg1[%c1_63, %c0_64] : memref<3x512xf32, #tpu.memory_space<vmem>>, vector<1x512xf32>
    %170 = vector.broadcast %168 : vector<4x1xf32> to vector<4x512xf32>
    %171 = vector.broadcast %169 : vector<1x512xf32> to vector<4x512xf32>
    %172 = arith.mulf %170, %171 : vector<4x512xf32>
    %173 = arith.addf %167, %172 : vector<4x512xf32>
    %174 = vector.extract_strided_slice %159 {offsets = [0, 2], sizes = [4, 1], strides = [1, 1]} : vector<4x3xf32> to vector<4x1xf32>
    %c2_65 = arith.constant 2 : index
    %c0_66 = arith.constant 0 : index
    %175 = vector.load %arg1[%c2_65, %c0_66] : memref<3x512xf32, #tpu.memory_space<vmem>>, vector<1x512xf32>
    %176 = vector.broadcast %174 : vector<4x1xf32> to vector<4x512xf32>
    %177 = vector.broadcast %175 : vector<1x512xf32> to vector<4x512xf32>
    %178 = arith.mulf %176, %177 : vector<4x512xf32>
    %179 = arith.addf %173, %178 : vector<4x512xf32>
    %180 = arith.truncf %157 : vector<4x128xf32> to vector<4x128xbf16>
    %c0_67 = arith.constant 0 : index
    %c0_68 = arith.constant 0 : index
    %181 = vector.load %arg2[%c0_67, %c0_68] : memref<128x512xbf16, #tpu.memory_space<vmem>>, vector<128x512xbf16>
    %cst_69 = arith.constant dense<0.000000e+00> : vector<4x512xf32>
    %182 = tpu.matmul %180, %181, %cst_69 {dimension_numbers = #tpu.dot_dimension_numbers<[1], [0], [0], [1], [0, 0, 1, 1], [], []>} : vector<4x128xbf16>, vector<128x512xbf16>, vector<4x512xf32> -> vector<4x512xf32>
    %183 = arith.addf %182, %179 : vector<4x512xf32>
    %184 = math.tanh %183 : vector<4x512xf32>
    %cst_70 = arith.constant 5.000000e-01 : f32
    %185 = vector.broadcast %cst_70 : f32 to vector<4x512xf32>
    %186 = arith.mulf %185, %184 : vector<4x512xf32>
    %cst_71 = arith.constant 5.000000e-01 : f32
    %187 = vector.broadcast %cst_71 : f32 to vector<4x512xf32>
    %188 = arith.addf %186, %187 : vector<4x512xf32>
    %189 = vector.extract_strided_slice %188 {offsets = [0, 0], sizes = [4, 128], strides = [1, 1]} : vector<4x512xf32> to vector<4x128xf32>
    %190 = vector.extract_strided_slice %188 {offsets = [0, 128], sizes = [4, 128], strides = [1, 1]} : vector<4x512xf32> to vector<4x128xf32>
    %191 = vector.extract_strided_slice %188 {offsets = [0, 256], sizes = [4, 128], strides = [1, 1]} : vector<4x512xf32> to vector<4x128xf32>
    %192 = vector.extract_strided_slice %184 {offsets = [0, 384], sizes = [4, 128], strides = [1, 1]} : vector<4x512xf32> to vector<4x128xf32>
    %193 = arith.mulf %190, %155 : vector<4x128xf32>
    %194 = arith.mulf %189, %192 : vector<4x128xf32>
    %195 = arith.addf %193, %194 : vector<4x128xf32>
    %196 = math.tanh %195 : vector<4x128xf32>
    %197 = arith.mulf %191, %196 : vector<4x128xf32>
    %c5 = arith.constant 5 : index
    %c0_72 = arith.constant 0 : index
    %c0_73 = arith.constant 0 : index
    %198 = vector.load %arg0[%c5, %c0_72, %c0_73] : memref<8x4x3xf32, #tpu.memory_space<vmem>>, vector<1x4x3xf32>
    %199 = vector.shape_cast %198 : vector<1x4x3xf32> to vector<4x3xf32>
    %c0_74 = arith.constant 0 : index
    %c0_75 = arith.constant 0 : index
    %200 = vector.load %arg3[%c0_74, %c0_75] : memref<1x512xf32, #tpu.memory_space<vmem>>, vector<1x512xf32>
    %201 = vector.extract_strided_slice %199 {offsets = [0, 0], sizes = [4, 1], strides = [1, 1]} : vector<4x3xf32> to vector<4x1xf32>
    %c0_76 = arith.constant 0 : index
    %c0_77 = arith.constant 0 : index
    %202 = vector.load %arg1[%c0_76, %c0_77] : memref<3x512xf32, #tpu.memory_space<vmem>>, vector<1x512xf32>
    %203 = vector.broadcast %201 : vector<4x1xf32> to vector<4x512xf32>
    %204 = vector.broadcast %202 : vector<1x512xf32> to vector<4x512xf32>
    %205 = arith.mulf %203, %204 : vector<4x512xf32>
    %206 = vector.broadcast %200 : vector<1x512xf32> to vector<4x512xf32>
    %207 = arith.addf %206, %205 : vector<4x512xf32>
    %208 = vector.extract_strided_slice %199 {offsets = [0, 1], sizes = [4, 1], strides = [1, 1]} : vector<4x3xf32> to vector<4x1xf32>
    %c1_78 = arith.constant 1 : index
    %c0_79 = arith.constant 0 : index
    %209 = vector.load %arg1[%c1_78, %c0_79] : memref<3x512xf32, #tpu.memory_space<vmem>>, vector<1x512xf32>
    %210 = vector.broadcast %208 : vector<4x1xf32> to vector<4x512xf32>
    %211 = vector.broadcast %209 : vector<1x512xf32> to vector<4x512xf32>
    %212 = arith.mulf %210, %211 : vector<4x512xf32>
    %213 = arith.addf %207, %212 : vector<4x512xf32>
    %214 = vector.extract_strided_slice %199 {offsets = [0, 2], sizes = [4, 1], strides = [1, 1]} : vector<4x3xf32> to vector<4x1xf32>
    %c2_80 = arith.constant 2 : index
    %c0_81 = arith.constant 0 : index
    %215 = vector.load %arg1[%c2_80, %c0_81] : memref<3x512xf32, #tpu.memory_space<vmem>>, vector<1x512xf32>
    %216 = vector.broadcast %214 : vector<4x1xf32> to vector<4x512xf32>
    %217 = vector.broadcast %215 : vector<1x512xf32> to vector<4x512xf32>
    %218 = arith.mulf %216, %217 : vector<4x512xf32>
    %219 = arith.addf %213, %218 : vector<4x512xf32>
    %220 = arith.truncf %197 : vector<4x128xf32> to vector<4x128xbf16>
    %c0_82 = arith.constant 0 : index
    %c0_83 = arith.constant 0 : index
    %221 = vector.load %arg2[%c0_82, %c0_83] : memref<128x512xbf16, #tpu.memory_space<vmem>>, vector<128x512xbf16>
    %cst_84 = arith.constant dense<0.000000e+00> : vector<4x512xf32>
    %222 = tpu.matmul %220, %221, %cst_84 {dimension_numbers = #tpu.dot_dimension_numbers<[1], [0], [0], [1], [0, 0, 1, 1], [], []>} : vector<4x128xbf16>, vector<128x512xbf16>, vector<4x512xf32> -> vector<4x512xf32>
    %223 = arith.addf %222, %219 : vector<4x512xf32>
    %224 = math.tanh %223 : vector<4x512xf32>
    %cst_85 = arith.constant 5.000000e-01 : f32
    %225 = vector.broadcast %cst_85 : f32 to vector<4x512xf32>
    %226 = arith.mulf %225, %224 : vector<4x512xf32>
    %cst_86 = arith.constant 5.000000e-01 : f32
    %227 = vector.broadcast %cst_86 : f32 to vector<4x512xf32>
    %228 = arith.addf %226, %227 : vector<4x512xf32>
    %229 = vector.extract_strided_slice %228 {offsets = [0, 0], sizes = [4, 128], strides = [1, 1]} : vector<4x512xf32> to vector<4x128xf32>
    %230 = vector.extract_strided_slice %228 {offsets = [0, 128], sizes = [4, 128], strides = [1, 1]} : vector<4x512xf32> to vector<4x128xf32>
    %231 = vector.extract_strided_slice %228 {offsets = [0, 256], sizes = [4, 128], strides = [1, 1]} : vector<4x512xf32> to vector<4x128xf32>
    %232 = vector.extract_strided_slice %224 {offsets = [0, 384], sizes = [4, 128], strides = [1, 1]} : vector<4x512xf32> to vector<4x128xf32>
    %233 = arith.mulf %230, %195 : vector<4x128xf32>
    %234 = arith.mulf %229, %232 : vector<4x128xf32>
    %235 = arith.addf %233, %234 : vector<4x128xf32>
    %236 = math.tanh %235 : vector<4x128xf32>
    %237 = arith.mulf %231, %236 : vector<4x128xf32>
    %c6 = arith.constant 6 : index
    %c0_87 = arith.constant 0 : index
    %c0_88 = arith.constant 0 : index
    %238 = vector.load %arg0[%c6, %c0_87, %c0_88] : memref<8x4x3xf32, #tpu.memory_space<vmem>>, vector<1x4x3xf32>
    %239 = vector.shape_cast %238 : vector<1x4x3xf32> to vector<4x3xf32>
    %c0_89 = arith.constant 0 : index
    %c0_90 = arith.constant 0 : index
    %240 = vector.load %arg3[%c0_89, %c0_90] : memref<1x512xf32, #tpu.memory_space<vmem>>, vector<1x512xf32>
    %241 = vector.extract_strided_slice %239 {offsets = [0, 0], sizes = [4, 1], strides = [1, 1]} : vector<4x3xf32> to vector<4x1xf32>
    %c0_91 = arith.constant 0 : index
    %c0_92 = arith.constant 0 : index
    %242 = vector.load %arg1[%c0_91, %c0_92] : memref<3x512xf32, #tpu.memory_space<vmem>>, vector<1x512xf32>
    %243 = vector.broadcast %241 : vector<4x1xf32> to vector<4x512xf32>
    %244 = vector.broadcast %242 : vector<1x512xf32> to vector<4x512xf32>
    %245 = arith.mulf %243, %244 : vector<4x512xf32>
    %246 = vector.broadcast %240 : vector<1x512xf32> to vector<4x512xf32>
    %247 = arith.addf %246, %245 : vector<4x512xf32>
    %248 = vector.extract_strided_slice %239 {offsets = [0, 1], sizes = [4, 1], strides = [1, 1]} : vector<4x3xf32> to vector<4x1xf32>
    %c1_93 = arith.constant 1 : index
    %c0_94 = arith.constant 0 : index
    %249 = vector.load %arg1[%c1_93, %c0_94] : memref<3x512xf32, #tpu.memory_space<vmem>>, vector<1x512xf32>
    %250 = vector.broadcast %248 : vector<4x1xf32> to vector<4x512xf32>
    %251 = vector.broadcast %249 : vector<1x512xf32> to vector<4x512xf32>
    %252 = arith.mulf %250, %251 : vector<4x512xf32>
    %253 = arith.addf %247, %252 : vector<4x512xf32>
    %254 = vector.extract_strided_slice %239 {offsets = [0, 2], sizes = [4, 1], strides = [1, 1]} : vector<4x3xf32> to vector<4x1xf32>
    %c2_95 = arith.constant 2 : index
    %c0_96 = arith.constant 0 : index
    %255 = vector.load %arg1[%c2_95, %c0_96] : memref<3x512xf32, #tpu.memory_space<vmem>>, vector<1x512xf32>
    %256 = vector.broadcast %254 : vector<4x1xf32> to vector<4x512xf32>
    %257 = vector.broadcast %255 : vector<1x512xf32> to vector<4x512xf32>
    %258 = arith.mulf %256, %257 : vector<4x512xf32>
    %259 = arith.addf %253, %258 : vector<4x512xf32>
    %260 = arith.truncf %237 : vector<4x128xf32> to vector<4x128xbf16>
    %c0_97 = arith.constant 0 : index
    %c0_98 = arith.constant 0 : index
    %261 = vector.load %arg2[%c0_97, %c0_98] : memref<128x512xbf16, #tpu.memory_space<vmem>>, vector<128x512xbf16>
    %cst_99 = arith.constant dense<0.000000e+00> : vector<4x512xf32>
    %262 = tpu.matmul %260, %261, %cst_99 {dimension_numbers = #tpu.dot_dimension_numbers<[1], [0], [0], [1], [0, 0, 1, 1], [], []>} : vector<4x128xbf16>, vector<128x512xbf16>, vector<4x512xf32> -> vector<4x512xf32>
    %263 = arith.addf %262, %259 : vector<4x512xf32>
    %264 = math.tanh %263 : vector<4x512xf32>
    %cst_100 = arith.constant 5.000000e-01 : f32
    %265 = vector.broadcast %cst_100 : f32 to vector<4x512xf32>
    %266 = arith.mulf %265, %264 : vector<4x512xf32>
    %cst_101 = arith.constant 5.000000e-01 : f32
    %267 = vector.broadcast %cst_101 : f32 to vector<4x512xf32>
    %268 = arith.addf %266, %267 : vector<4x512xf32>
    %269 = vector.extract_strided_slice %268 {offsets = [0, 0], sizes = [4, 128], strides = [1, 1]} : vector<4x512xf32> to vector<4x128xf32>
    %270 = vector.extract_strided_slice %268 {offsets = [0, 128], sizes = [4, 128], strides = [1, 1]} : vector<4x512xf32> to vector<4x128xf32>
    %271 = vector.extract_strided_slice %268 {offsets = [0, 256], sizes = [4, 128], strides = [1, 1]} : vector<4x512xf32> to vector<4x128xf32>
    %272 = vector.extract_strided_slice %264 {offsets = [0, 384], sizes = [4, 128], strides = [1, 1]} : vector<4x512xf32> to vector<4x128xf32>
    %273 = arith.mulf %270, %235 : vector<4x128xf32>
    %274 = arith.mulf %269, %272 : vector<4x128xf32>
    %275 = arith.addf %273, %274 : vector<4x128xf32>
    %276 = math.tanh %275 : vector<4x128xf32>
    %277 = arith.mulf %271, %276 : vector<4x128xf32>
    %c7 = arith.constant 7 : index
    %c0_102 = arith.constant 0 : index
    %c0_103 = arith.constant 0 : index
    %278 = vector.load %arg0[%c7, %c0_102, %c0_103] : memref<8x4x3xf32, #tpu.memory_space<vmem>>, vector<1x4x3xf32>
    %279 = vector.shape_cast %278 : vector<1x4x3xf32> to vector<4x3xf32>
    %c0_104 = arith.constant 0 : index
    %c0_105 = arith.constant 0 : index
    %280 = vector.load %arg3[%c0_104, %c0_105] : memref<1x512xf32, #tpu.memory_space<vmem>>, vector<1x512xf32>
    %281 = vector.extract_strided_slice %279 {offsets = [0, 0], sizes = [4, 1], strides = [1, 1]} : vector<4x3xf32> to vector<4x1xf32>
    %c0_106 = arith.constant 0 : index
    %c0_107 = arith.constant 0 : index
    %282 = vector.load %arg1[%c0_106, %c0_107] : memref<3x512xf32, #tpu.memory_space<vmem>>, vector<1x512xf32>
    %283 = vector.broadcast %281 : vector<4x1xf32> to vector<4x512xf32>
    %284 = vector.broadcast %282 : vector<1x512xf32> to vector<4x512xf32>
    %285 = arith.mulf %283, %284 : vector<4x512xf32>
    %286 = vector.broadcast %280 : vector<1x512xf32> to vector<4x512xf32>
    %287 = arith.addf %286, %285 : vector<4x512xf32>
    %288 = vector.extract_strided_slice %279 {offsets = [0, 1], sizes = [4, 1], strides = [1, 1]} : vector<4x3xf32> to vector<4x1xf32>
    %c1_108 = arith.constant 1 : index
    %c0_109 = arith.constant 0 : index
    %289 = vector.load %arg1[%c1_108, %c0_109] : memref<3x512xf32, #tpu.memory_space<vmem>>, vector<1x512xf32>
    %290 = vector.broadcast %288 : vector<4x1xf32> to vector<4x512xf32>
    %291 = vector.broadcast %289 : vector<1x512xf32> to vector<4x512xf32>
    %292 = arith.mulf %290, %291 : vector<4x512xf32>
    %293 = arith.addf %287, %292 : vector<4x512xf32>
    %294 = vector.extract_strided_slice %279 {offsets = [0, 2], sizes = [4, 1], strides = [1, 1]} : vector<4x3xf32> to vector<4x1xf32>
    %c2_110 = arith.constant 2 : index
    %c0_111 = arith.constant 0 : index
    %295 = vector.load %arg1[%c2_110, %c0_111] : memref<3x512xf32, #tpu.memory_space<vmem>>, vector<1x512xf32>
    %296 = vector.broadcast %294 : vector<4x1xf32> to vector<4x512xf32>
    %297 = vector.broadcast %295 : vector<1x512xf32> to vector<4x512xf32>
    %298 = arith.mulf %296, %297 : vector<4x512xf32>
    %299 = arith.addf %293, %298 : vector<4x512xf32>
    %300 = arith.truncf %277 : vector<4x128xf32> to vector<4x128xbf16>
    %c0_112 = arith.constant 0 : index
    %c0_113 = arith.constant 0 : index
    %301 = vector.load %arg2[%c0_112, %c0_113] : memref<128x512xbf16, #tpu.memory_space<vmem>>, vector<128x512xbf16>
    %cst_114 = arith.constant dense<0.000000e+00> : vector<4x512xf32>
    %302 = tpu.matmul %300, %301, %cst_114 {dimension_numbers = #tpu.dot_dimension_numbers<[1], [0], [0], [1], [0, 0, 1, 1], [], []>} : vector<4x128xbf16>, vector<128x512xbf16>, vector<4x512xf32> -> vector<4x512xf32>
    %303 = arith.addf %302, %299 : vector<4x512xf32>
    %304 = math.tanh %303 : vector<4x512xf32>
    %cst_115 = arith.constant 5.000000e-01 : f32
    %305 = vector.broadcast %cst_115 : f32 to vector<4x512xf32>
    %306 = arith.mulf %305, %304 : vector<4x512xf32>
    %cst_116 = arith.constant 5.000000e-01 : f32
    %307 = vector.broadcast %cst_116 : f32 to vector<4x512xf32>
    %308 = arith.addf %306, %307 : vector<4x512xf32>
    %309 = vector.extract_strided_slice %308 {offsets = [0, 0], sizes = [4, 128], strides = [1, 1]} : vector<4x512xf32> to vector<4x128xf32>
    %310 = vector.extract_strided_slice %308 {offsets = [0, 128], sizes = [4, 128], strides = [1, 1]} : vector<4x512xf32> to vector<4x128xf32>
    %311 = vector.extract_strided_slice %308 {offsets = [0, 256], sizes = [4, 128], strides = [1, 1]} : vector<4x512xf32> to vector<4x128xf32>
    %312 = vector.extract_strided_slice %304 {offsets = [0, 384], sizes = [4, 128], strides = [1, 1]} : vector<4x512xf32> to vector<4x128xf32>
    %313 = arith.mulf %310, %275 : vector<4x128xf32>
    %314 = arith.mulf %309, %312 : vector<4x128xf32>
    %315 = arith.addf %313, %314 : vector<4x128xf32>
    %316 = math.tanh %315 : vector<4x128xf32>
    %317 = arith.mulf %311, %316 : vector<4x128xf32>
    %c0_117 = arith.constant 0 : index
    %c0_118 = arith.constant 0 : index
    %318 = vector.load %arg3[%c0_117, %c0_118] : memref<1x512xf32, #tpu.memory_space<vmem>>, vector<1x512xf32>
    %319 = arith.truncf %317 : vector<4x128xf32> to vector<4x128xbf16>
    %c0_119 = arith.constant 0 : index
    %c0_120 = arith.constant 0 : index
    %320 = vector.load %arg2[%c0_119, %c0_120] : memref<128x512xbf16, #tpu.memory_space<vmem>>, vector<128x512xbf16>
    %cst_121 = arith.constant dense<0.000000e+00> : vector<4x512xf32>
    %321 = tpu.matmul %319, %320, %cst_121 {dimension_numbers = #tpu.dot_dimension_numbers<[1], [0], [0], [1], [0, 0, 1, 1], [], []>} : vector<4x128xbf16>, vector<128x512xbf16>, vector<4x512xf32> -> vector<4x512xf32>
    %322 = vector.broadcast %318 : vector<1x512xf32> to vector<4x512xf32>
    %323 = arith.addf %321, %322 : vector<4x512xf32>
    %324 = math.tanh %323 : vector<4x512xf32>
    %cst_122 = arith.constant 5.000000e-01 : f32
    %325 = vector.broadcast %cst_122 : f32 to vector<4x512xf32>
    %326 = arith.mulf %325, %324 : vector<4x512xf32>
    %cst_123 = arith.constant 5.000000e-01 : f32
    %327 = vector.broadcast %cst_123 : f32 to vector<4x512xf32>
    %328 = arith.addf %326, %327 : vector<4x512xf32>
    %329 = vector.extract_strided_slice %328 {offsets = [0, 0], sizes = [4, 128], strides = [1, 1]} : vector<4x512xf32> to vector<4x128xf32>
    %330 = vector.extract_strided_slice %328 {offsets = [0, 128], sizes = [4, 128], strides = [1, 1]} : vector<4x512xf32> to vector<4x128xf32>
    %331 = vector.extract_strided_slice %328 {offsets = [0, 256], sizes = [4, 128], strides = [1, 1]} : vector<4x512xf32> to vector<4x128xf32>
    %332 = vector.extract_strided_slice %324 {offsets = [0, 384], sizes = [4, 128], strides = [1, 1]} : vector<4x512xf32> to vector<4x128xf32>
    %333 = arith.mulf %330, %315 : vector<4x128xf32>
    %334 = arith.mulf %329, %332 : vector<4x128xf32>
    %335 = arith.addf %333, %334 : vector<4x128xf32>
    %336 = math.tanh %335 : vector<4x128xf32>
    %337 = arith.mulf %331, %336 : vector<4x128xf32>
    %c0_124 = arith.constant 0 : index
    %c0_125 = arith.constant 0 : index
    %338 = vector.load %arg4[%c0_124, %c0_125] : memref<128x3xf32, #tpu.memory_space<vmem>>, vector<128x3xf32>
    %cst_126 = arith.constant dense<0.000000e+00> : vector<4x3xf32>
    %339 = tpu.matmul %337, %338, %cst_126 {dimension_numbers = #tpu.dot_dimension_numbers<[1], [0], [0], [1], [0, 0, 1, 1], [], []>} : vector<4x128xf32>, vector<128x3xf32>, vector<4x3xf32> -> vector<4x3xf32>
    %c0_127 = arith.constant 0 : index
    %c0_128 = arith.constant 0 : index
    %340 = vector.load %arg5[%c0_127, %c0_128] : memref<1x3xf32, #tpu.memory_space<vmem>>, vector<1x3xf32>
    %341 = vector.broadcast %340 : vector<1x3xf32> to vector<4x3xf32>
    %342 = arith.addf %339, %341 : vector<4x3xf32>
    %c0_129 = arith.constant 0 : index
    %c0_130 = arith.constant 0 : index
    %343 = vector.load %arg6[%c0_129, %c0_130] : memref<4x3xf32, #tpu.memory_space<vmem>>, vector<4x3xf32>
    tpu.vector_store %arg6[%c0_129, %c0_130], %342 {strides = array<i32>} : memref<4x3xf32, #tpu.memory_space<vmem>>, vector<4x3xf32>,
    return
  }
}

</mosaic_0001>

<bundles_post_ra>
// kernel: weather_lstm_forward.1
= control target key start
LH: loop header
LB: loop body
LE: loop exit
PB: predicated region body
PF: predicated region fallthrough
CT: control target
= control target key end

     0   :  { %11 = vsyncpa [#allocation3], 0  ;;  %s2686_s0 = inlined_call_operand.vmem [shape: f32[8,4,3], index: 0, kind: input, shape index: {}]   ;;  %s2687_s1 = inlined_call_operand.vmem [shape: f32[3,512], index: 1, kind: input, shape index: {}]   ;;  %s2688_s2 = inlined_call_operand.hbm [shape: bf16[128,512], index: 2, kind: input, shape index: {}]   ;;  %s2689_s3 = inlined_call_operand.vmem [shape: f32[1,512], index: 3, kind: input, shape index: {}]   ;;  %s2690_s4 = inlined_call_operand.vmem [shape: f32[128,3], index: 4, kind: input, shape index: {}]   ;;  %s2691_s5 = inlined_call_operand.vmem [shape: f32[1,3], index: 5, kind: input, shape index: {}]   ;;  %s2692_s6 = inlined_call_operand.hbm [shape: f32[4,3], index: 6, kind: output, shape index: {}]  }
   0x1   :  { %12 = vsyncpa [#allocation4], 0  ;;  %s1898_s21 = smov [#allocation2]   ;;  %s1850_s25 = scalar_lea.hbm %s2688_s2, 4096 }
   0x2   :  { %s22_s22 = sshll.u32 %s1898_s21, 4  ;;  %p1851_p0 = scmp.ne.s32.totalorder %s2688_s2, %s1850_s25  ;;  %s23_s22 = int_to_ptr.vmem [resolvable:$true] %s22_s22 }
   0x3   :  { %p1854_p1 = scmp.lt.u32.totalorder %s1850_s25, %s2688_s2 }
   0x5   :  { %p1856_p2 = pnand %p1854_p1, %p1851_p0 }
   0x7   :  { %1859 = shalt.err (!%p1856_p2)
}
   0x8   :  { %s1860_s30 = scalar_lea.vmem %s23_s22, 4096  ;;  %p1865_p4 = scmp.lt.s32.totalorder %s23_s22, %s23_s22 }
   0x9   :  { %p1861_p3 = scmp.ne.s32.totalorder %s23_s22, %s1860_s30  ;;  %p1866_p5 = scmp.lt.s32.totalorder %s1860_s30, %s1860_s30 }
   0xb   :  { %p1867_p6 = por %p1866_p5, %p1865_p4 }
   0xd   :  { %p1868_p7 = pnand %p1867_p6, %p1861_p3 }
   0xf   :  { %1871 = shalt.err (!%p1868_p7)
}
  0x10   :  { %s1899_s7 = smov 256   ;;  %s1900_s8 = smov 16  }
  0x11   :  { %28 = dma.hbm_to_vmem [thread:$0]  %s2688_s2, 4096, %s23_s22, [#allocation3], %s1899_s7, %s1899_s7, %s1900_s8  }
  0x12   :  { %1894 = dma.done.wait [#allocation3], 4096  }
  0x13   :  { %1895 = vsyncadd [#allocation3], 4294963200  ;;  %v2697_v0 = vmov 0   ;;  %v2695_v1 = vmov 2   ;;  %v39_v2 = vld [vmem:[%s2686_s0] sm:$0xf]  ;;  %v2699_v34 = vlaneseq }
  0x14   :  { %1662 = vset.pattern.permute.xlu0 %v2697_v0  ;;  %1664 = vset.pattern.permute.xlu1 %v2695_v1  ;;  %v2693_v3 = vmov 1   ;;  %v1965_v4 = vld [vmem:[#allocation2 + $0x4] ss:$16 sps:$4 sm:$0xff]   ;;  %v1967_v5 = vld [vmem:[#allocation2 + $0xc] ss:$16 sps:$4 sm:$0xff]   ;;  %vm1905_vm1 = vmmov 0  }
  0x15   :  { %439 = vmatprep.mubr.bf16.mxu0 %v2697_v0  ;;  %480 = vmatprep.mubr.bf16.mxu1 %v2697_v0  ;;  %2748 = vst [vmem:[#allocation8_spill] sm:$0xff] %v1965_v4  ;;  %2749 = vst [vmem:[#allocation9_spill] sm:$0xff] %v1967_v5  ;;  %v1969_v6 = vld [vmem:[#allocation2] ss:$16 sps:$4 sm:$0xff]   ;;  %v1971_v7 = vld [vmem:[#allocation2 + $0x8] ss:$16 sps:$4 sm:$0xff]  }
  0x16   :  { %44 = vperm.xlu0 %1662, %v39_v2   ;;  %131 = vperm.xlu1 %1664, %v39_v2   ;;  %v1977_v8 = vld [vmem:[#allocation2 + $0x24] ss:$16 sps:$4 sm:$0xff]   ;;  %v1979_v9 = vld [vmem:[#allocation2 + $0x2c] ss:$16 sps:$4 sm:$0xff]   ;;  %v1981_v10 = vld [vmem:[#allocation2 + $0x20] ss:$16 sps:$4 sm:$0xff]  }
  0x17   :  { %407 = vmatprep.subr.bf16.mxu0 %v1965_v4  ;;  %448 = vmatprep.subr.bf16.mxu1 %v1967_v5  ;;  %v1983_v11 = vld [vmem:[#allocation2 + $0x28] ss:$16 sps:$4 sm:$0xff]   ;;  %v1989_v12 = vld [vmem:[#allocation2 + $0x44] ss:$16 sps:$4 sm:$0xff]   ;;  %v1991_v13 = vld [vmem:[#allocation2 + $0x4c] ss:$16 sps:$4 sm:$0xff]  }
  0x18   :  { %408 = vmatpush1.bf16.msra.mxu0 %v1969_v6  ;;  %449 = vmatpush1.bf16.msra.mxu1 %v1971_v7  ;;  %v1993_v14 = vld [vmem:[#allocation2 + $0x40] ss:$16 sps:$4 sm:$0xff]   ;;  %v1995_v15 = vld [vmem:[#allocation2 + $0x48] ss:$16 sps:$4 sm:$0xff]   ;;  %v2001_v16 = vld [vmem:[#allocation2 + $0x64] ss:$16 sps:$4 sm:$0xff]  }
  0x19   :  { %409 = vmatprep.subr.bf16.mxu0 %v1977_v8  ;;  %450 = vmatprep.subr.bf16.mxu1 %v1979_v9  ;;  %v2003_v17 = vld [vmem:[#allocation2 + $0x6c] ss:$16 sps:$4 sm:$0xff]   ;;  %v2005_v18 = vld [vmem:[#allocation2 + $0x60] ss:$16 sps:$4 sm:$0xff]   ;;  %v2007_v19 = vld [vmem:[#allocation2 + $0x68] ss:$16 sps:$4 sm:$0xff]  }
  0x1a   :  { %1663 = vset.pattern.permute.xlu0 %v2693_v3  ;;  %1665 = vset.pattern.permute.xlu1 %v2697_v0  ;;  %v2013_v20 = vld [vmem:[#allocation2 + $0x84] ss:$16 sps:$4 sm:$0xff]   ;;  %v2015_v21 = vld [vmem:[#allocation2 + $0x8c] ss:$16 sps:$4 sm:$0xff]   ;;  %v2017_v22 = vld [vmem:[#allocation2 + $0x80] ss:$16 sps:$4 sm:$0xff]  }
  0x1b   :  { %98 = vperm.xlu0 %1663, %v39_v2   ;;  %v2019_v23 = vld [vmem:[#allocation2 + $0x88] ss:$16 sps:$4 sm:$0xff]   ;;  %v2021_v24 = vld [vmem:[#allocation2 + $0xa4] ss:$16 sps:$4 sm:$0xff]   ;;  %v2025_v25 = vld [vmem:[#allocation2 + $0xac] ss:$16 sps:$4 sm:$0xff]  }
  0x1c   :  { %410 = vmatpush1.bf16.msra.mxu0 %v1981_v10  ;;  %451 = vmatpush1.bf16.msra.mxu1 %v1983_v11  ;;  %v2029_v26 = vld [vmem:[#allocation2 + $0xa0] ss:$16 sps:$4 sm:$0xff]   ;;  %v2031_v27 = vld [vmem:[#allocation2 + $0xa8] ss:$16 sps:$4 sm:$0xff]   ;;  %v2035_v28 = vld [vmem:[#allocation2 + $0xc4] ss:$16 sps:$4 sm:$0xff]  }
  0x1d   :  { %411 = vmatprep.subr.bf16.mxu0 %v1989_v12  ;;  %452 = vmatprep.subr.bf16.mxu1 %v1991_v13  ;;  %v2037_v29 = vld [vmem:[#allocation2 + $0xcc] ss:$16 sps:$4 sm:$0xff]   ;;  %v2041_v30 = vld [vmem:[#allocation2 + $0xc0] ss:$16 sps:$4 sm:$0xff]   ;;  %v2043_v31 = vld [vmem:[#allocation2 + $0xc8] ss:$16 sps:$4 sm:$0xff]  }
  0x1e   :  { %v2047_v32 = vld [vmem:[#allocation2 + $0xe4] ss:$16 sps:$4 sm:$0xff]   ;;  %v2049_v33 = vld [vmem:[#allocation2 + $0xec] ss:$16 sps:$4 sm:$0xff]   ;;  %v2053_v35 = vld [vmem:[#allocation2 + $0xe0] ss:$16 sps:$4 sm:$0xff]  }
  0x1f   :  { %1667 = vset.pattern.permute.xlu0 %v2695_v1  ;;  %v2055_v36 = vld [vmem:[#allocation2 + $0xe8] ss:$16 sps:$4 sm:$0xff]   ;;  %v49_v37 = vshrl.u32 %v2699_v34, 7  ;;  %v1536_v38 = vld [vmem:[%s2686_s0 + $0x4] sm:$0xf]  ;;  %s1907_s12 = smov [#allocation5]  }
  0x20   :  { %412 = vmatpush1.bf16.msra.mxu0 %v1993_v14  ;;  %453 = vmatpush1.bf16.msra.mxu1 %v1995_v15  ;;  %2750 = vst [vmem:[#allocation10_spill] sm:$0xff] %v2055_v36  ;;  %v41_v40 = vld [vmem:[%s2687_s1] ss:$4 sm:$0xf]  ;;  %s1525_s2 = sshll.u32 %s1907_s12, 4  ;;  %vm1517_vm2 = vcmask 19456   ;;  %s1526_s2 = int_to_ptr.vmem [resolvable:$true] %s1525_s2 }
  0x21   :  { %413 = vmatprep.subr.bf16.mxu0 %v2001_v16  ;;  %454 = vmatprep.subr.bf16.mxu1 %v2003_v17  ;;  %v2065_v39 = vsub.s32 1, %v49_v37  ;;  %v1534_v41 = vld [vmem:[%s2687_s1 + $0x1] ss:$4 sm:$0xf]  ;;  %v50_v45 = vsub.s32 0, %v49_v37  ;;  %v62_v46 = vsub.s32 3, %v49_v37  ;;  %p1877_p9 = scmp.lt.s32.totalorder %s1526_s2, %s1526_s2 }
  0x22   :  { %179 = vperm.xlu1 %1665, %v1536_v38   ;;  %203 = vperm.xlu0 %1667, %v1536_v38   ;;  %v1569_v44 = vld [vmem:[%s2686_s0 + $0x8] sm:$0xf]  ;;  %v2092_v47 = vld [vmem:[%s2689_s3] sm:$0xf]  ;;  %v58_v51 = vsub.s32 2, %v49_v37  ;;  %s1872_s13 = scalar_lea.vmem %s1526_s2, 64 }
  0x23   :  { %v2076_v42 = vrot.slane %v41_v40, %v2065_v39  ;;  %v2079_v43 = vrot.slane %v1534_v41, %v2065_v39  ;;  %v2094_v48 = vrot.slane %v41_v40, %v50_v45  ;;  %v2096_v49 = vrot.slane %v41_v40, %v62_v46  ;;  %v2101_v50 = vld [vmem:[%s2687_s1 + $0x2] ss:$4 sm:$0xf]  ;;  %p1873_p8 = scmp.ne.s32.totalorder %s1526_s2, %s1872_s13  ;;  %p1878_p10 = scmp.lt.s32.totalorder %s1872_s13, %s1872_s13 }
  0x24   :  { %414 = vmatpush1.bf16.msra.mxu0 %v2005_v18  ;;  %455 = vmatpush1.bf16.msra.mxu1 %v2007_v19  ;;  %v2104_v53 = vrot.slane %v2092_v47, %v50_v45  ;;  %v2107_v54 = vrot.slane %v2092_v47, %v62_v46  ;;  %v2110_v55 = vrot.slane %v2101_v50, %v50_v45 }
  0x25   :  { %415 = vmatprep.subr.bf16.mxu0 %v2013_v20  ;;  %456 = vmatprep.subr.bf16.mxu1 %v2015_v21  ;;  %2751 = vst [vmem:[#allocation11_spill] sm:$0xff] %v2076_v42  ;;  %2752 = vst [vmem:[#allocation12_spill] sm:$0xff] %v2079_v43  ;;  %v2114_v58 = vrot.slane %v1534_v41, %v50_v45  ;;  %v2116_v59 = vrot.slane %v1534_v41, %v62_v46  ;;  %p1879_p11 = por %p1878_p10, %p1877_p9 }
  0x26   :  { %1666 = vset.pattern.permute.xlu1 %v2693_v3  ;;  %532 = vperm.xlu0 %1667, %v1569_v44   ;;  %2753 = vst [vmem:[#allocation13_spill] sm:$0xff] %v2094_v48  ;;  %2754 = vst [vmem:[#allocation14_spill] sm:$0xff] %v2096_v49  ;;  %v2118_v61 = vrot.slane %v41_v40, %v58_v51  ;;  %v2121_v62 = vrot.slane %v2101_v50, %v62_v46 }
  0x27   :  { %191 = vperm.xlu1 %1666, %v1536_v38   ;;  %2755 = vst [vmem:[#allocation15_spill] sm:$0xff] %v2104_v53  ;;  %2756 = vst [vmem:[#allocation16_spill] sm:$0xff] %v2107_v54  ;;  %v2123_v63 = vrot.slane %v1534_v41, %v58_v51  ;;  %v2131_v1 = vrot.slane %v2092_v47, %v58_v51  ;;  %p1880_p12 = pnand %p1879_p11, %p1873_p8 }
  0x28   :  { %416 = vmatpush1.bf16.msra.mxu0 %v2017_v22  ;;  %457 = vmatpush1.bf16.msra.mxu1 %v2019_v23  ;;  %2757 = vst [vmem:[#allocation17_spill] sm:$0xff] %v2110_v55  ;;  %2758 = vst [vmem:[#allocation18_spill] sm:$0xff] %v2114_v58 }
  0x29   :  { %417 = vmatprep.subr.bf16.mxu0 %v2021_v24  ;;  %458 = vmatprep.subr.bf16.mxu1 %v2025_v25  ;;  %2759 = vst [vmem:[#allocation19_spill] sm:$0xff] %v2116_v59  ;;  %2760 = vst [vmem:[#allocation20_spill] sm:$0xff] %v2121_v62 }
  0x2a   :  { %1671 = vset.pattern.permute.xlu0 %v2693_v3  ;;  %2761 = vst [vmem:[#allocation21_spill] sm:$0xff] %v2123_v63 }
  0x2b   :  { %1668 = vset.pattern.permute.xlu1 %v2697_v0 }
  0x2c   :  { %418 = vmatpush1.bf16.msra.mxu0 %v2029_v26  ;;  %459 = vmatpush1.bf16.msra.mxu1 %v2031_v27 }
  0x2d   :  { %419 = vmatprep.subr.bf16.mxu0 %v2035_v28  ;;  %460 = vmatprep.subr.bf16.mxu1 %v2037_v29 }
  0x2e   :  { %508 = vperm.xlu1 %1668, %v1569_v44  }
  0x30   :  { %420 = vmatpush1.bf16.msra.mxu0 %v2041_v30  ;;  %461 = vmatpush1.bf16.msra.mxu1 %v2043_v31 }
  0x31   :  { %421 = vmatprep.subr.bf16.mxu0 %v2047_v32  ;;  %462 = vmatprep.subr.bf16.mxu1 %v2049_v33 }
  0x32   :  { %1669 = vset.pattern.permute.xlu1 %v2693_v3 }
  0x33   :  { %520 = vperm.xlu1 %1669, %v1569_v44  }
  0x34   :  { %422 = vmatpush1.bf16.msra.mxu0 %v2053_v35  ;;  %463 = vmatpush1.bf16.msra.mxu1 %v2055_v36 }
  0x35   :  { %544 = vmatprep.subr.bf16.mxu0 %v1965_v4  ;;  %585 = vmatprep.subr.bf16.mxu1 %v1967_v5 }
  0x37   :  { %1670 = vset.pattern.permute.xlu1 %v2697_v0 }
  0x95   :  { %v45_v52 = vpop.permute.xlu0 %44  ;;  %v132_v60 = vpop.permute.xlu1 %131 }
  0x96   :  { %v68_v56 = vmul.f32 %v2094_v48, %v45_v52  ;;  %v70_v57 = vmul.f32 %v2096_v49, %v45_v52  ;;  %v155_v37 = vmul.f32 %v2110_v55, %v132_v60  ;;  %v69_v40 = vmul.f32 %v2118_v61, %v45_v52 }
  0x97   :  { %v157_v41 = vmul.f32 %v2121_v62, %v132_v60  ;;  %v2137_v55 = vrot.slane %v2101_v50, %v58_v51 }
  0x98   :  { %v92_v38 = vadd.f32 %v2104_v53, %v68_v56  ;;  %v94_v44 = vadd.f32 %v2107_v54, %v70_v57  ;;  %v93_v57 = vadd.f32 %v2131_v1, %v69_v40 }
  0x99   :  { %v156_v43 = vmul.f32 %v2137_v55, %v132_v60 }
  0x9a   :  { %v99_v2 = vpop.permute.xlu0 %98 }
  0x9b   :  { %v122_v45 = vmul.f32 %v2114_v58, %v99_v2  ;;  %v124_v3 = vmul.f32 %v2116_v59, %v99_v2  ;;  %v123_v34 = vmul.f32 %v2123_v63, %v99_v2 }
  0x9d   :  { %v125_v46 = vadd.f32 %v122_v45, %v92_v38  ;;  %v127_v0 = vadd.f32 %v124_v3, %v94_v44  ;;  %v126_v59 = vadd.f32 %v123_v34, %v93_v57  ;;  %v2762_v38 = vlaneseq }
  0x9f   :  { %v158_v56 = vadd.f32 %v155_v37, %v125_v46  ;;  %v160_v54 = vadd.f32 %v157_v41, %v127_v0  ;;  %v159_v53 = vadd.f32 %v156_v43, %v126_v59  ;;  %v170_v3 = vand.u32 127, %v2762_v38  ;;  %v2765_v38 = vld [vmem:[#allocation15_spill] sm:$0xff] }
  0xa0   :  { %v2763_v43 = vmov 0   ;;  %v2183_v41 = vrot.slane %v2092_v47, %v2065_v39  ;;  %v2769_v47 = vld [vmem:[#allocation16_spill] sm:$0xff] }
  0xa1   :  { %1730 = vtanh.f32 %v158_v56  ;;  %vm171_vm0 = vcmp.lt.s32.totalorder %v170_v3, 64 }
  0xa2   :  { %1732 = vtanh.f32 %v160_v54  ;;  %2764 = vst [vmem:[#allocation22_spill] sm:$0xff] %v2183_v41 }
  0xa3   :  { %1734 = vtanh.f32 %v159_v53  ;;  %v180_v53 = vpop.permute.xlu1 %179 }
  0xa4   :  { %v182_v59 = vmul.f32 %v180_v53, %v2094_v48  ;;  %v183_v46 = vmul.f32 %v180_v53, %v2076_v42  ;;  %v185_v56 = vmul.f32 %v180_v53, %v2096_v49 }
  0xa6   :  { %v186_v3 = vadd.f32 %v182_v59, %v2765_v38  ;;  %v184_v38 = vmul.f32 %v180_v53, %v2118_v61 }
  0xa7   :  { %v192_v57 = vpop.permute.xlu1 %191 }
  0xab   :  { %v1731_v52 = vpop.eup %1730 }
  0xac   :  { %v164_v44 = vmul.f32 0.5, %v1731_v52  ;;  %v1733_v2 = vpop.eup %1732  ;;  %v194_v52 = vmul.f32 %v192_v57, %v2114_v58 }
  0xad   :  { %v1735_v0 = vpop.eup %1734 }
  0xae   :  { %v166_v45 = vadd.f32 0.5, %v164_v44  ;;  %v165_v37 = vmul.f32 0.5, %v1735_v0  ;;  %v2766_v44 = vld [vmem:[#allocation12_spill] sm:$0xff]  ;;  %v187_v0 = vadd.f32 %v183_v46, %v2183_v41 }
  0xb0   :  { %v168_v51 = vmul.f32 %v1733_v2, %v166_v45  ;;  %v167_v34 = vadd.f32 0.5, %v165_v37  ;;  %v195_v45 = vmul.f32 %v192_v57, %v2766_v44  ;;  %v204_v2 = vpop.permute.xlu0 %203  ;;  %v2768_v37 = vld [vmem:[#allocation19_spill] sm:$0xff] }
  0xb1   :  { %v209_v44 = vmul.f32 %v204_v2, %v2121_v62  ;;  %v208_v53 = vmul.f32 %v204_v2, %v2137_v55 }
  0xb2   :  { %v2142_v63 = vsel %vm171_vm0, %v168_v51, 0.0  ;;  %v2191_v51 = vrot.slane %v2101_v50, %v2065_v39  ;;  %v199_v42 = vadd.f32 %v195_v45, %v187_v0 }
  0xb3   :  { %1736 = vtanh.f32 %v2142_v63 }
  0xb4   :  { %2767 = vst [vmem:[#allocation23_spill] sm:$0xff] %v2191_v51  ;;  %v207_v58 = vmul.f32 %v204_v2, %v2191_v51 }
  0xbd   :  { %v1737_v40 = vpop.eup %1736 }
  0xbe   :  { %v174_v60 = vmul.f32 %v1737_v40, %v167_v34  ;;  %v197_v34 = vmul.f32 %v192_v57, %v2768_v37  ;;  %v189_v40 = vadd.f32 %v185_v56, %v2769_v47  ;;  %v2771_v56 = vld [vmem:[#allocation21_spill] sm:$0xff] }
  0xc0   :  { %v214_v54 = vpack.c.bf16 %v174_v60, %v174_v60  ;;  %v198_v60 = vadd.f32 %v194_v52, %v186_v3  ;;  %v201_v59 = vadd.f32 %v197_v34, %v189_v40  ;;  %v196_v52 = vmul.f32 %v192_v57, %v2771_v56 }
  0xc1   :  { %v188_v3 = vadd.f32 %v184_v38, %v2131_v1 }
  0xc2   :  { %440 = vmatmul.mubr.bf16.vlgmr.msra.gmra.mrb[0].mxu0 %v214_v54  ;;  %481 = vmatmul.mubr.bf16.vlgmr.msra.gmra.mrb[0].mxu1 %v214_v54  ;;  %v2770_v54 = vld [vmem:[#allocation17_spill] sm:$0xff]  ;;  %v213_v37 = vadd.f32 %v209_v44, %v201_v59 }
  0xc3   :  { %545 = vmatpush1.bf16.msra.mxu0 %v1969_v6  ;;  %586 = vmatpush1.bf16.msra.mxu1 %v1971_v7  ;;  %v206_v49 = vmul.f32 %v204_v2, %v2770_v54 }
  0xc4   :  { %546 = vmatprep.subr.bf16.mxu0 %v1977_v8  ;;  %587 = vmatprep.subr.bf16.mxu1 %v1979_v9 }
  0xc5   :  { %576 = vmatprep.mubr.bf16.mxu0 %v2763_v43  ;;  %617 = vmatprep.mubr.bf16.mxu1 %v2763_v43  ;;  %v210_v48 = vadd.f32 %v206_v49, %v198_v60  ;;  %v200_v49 = vadd.f32 %v196_v52, %v188_v3  ;;  %v2773_v52 = vld [vmem:[#allocation9_spill] sm:$0xff] }
  0xc6   :  { %v1570_v3 = vld [vmem:[%s2686_s0 + $0xc] sm:$0xf] }
  0xc7   :  { %547 = vmatpush1.bf16.msra.mxu0 %v1981_v10  ;;  %588 = vmatpush1.bf16.msra.mxu1 %v1983_v11 }
  0xc8   :  { %548 = vmatprep.subr.bf16.mxu0 %v1989_v12  ;;  %589 = vmatprep.subr.bf16.mxu1 %v1991_v13 }
  0xc9   :  { %645 = vperm.xlu1 %1670, %v1570_v3   ;;  %657 = vperm.xlu0 %1671, %v1570_v3  }
  0xcb   :  { %549 = vmatpush1.bf16.msra.mxu0 %v1993_v14  ;;  %590 = vmatpush1.bf16.msra.mxu1 %v1995_v15 }
  0xcc   :  { %550 = vmatprep.subr.bf16.mxu0 %v2001_v16  ;;  %591 = vmatprep.subr.bf16.mxu1 %v2003_v17 }
  0xcf   :  { %551 = vmatpush1.bf16.msra.mxu0 %v2005_v18  ;;  %592 = vmatpush1.bf16.msra.mxu1 %v2007_v19 }
  0xd0   :  { %552 = vmatprep.subr.bf16.mxu0 %v2013_v20  ;;  %593 = vmatprep.subr.bf16.mxu1 %v2015_v21 }
  0xd3   :  { %553 = vmatpush1.bf16.msra.mxu0 %v2017_v22  ;;  %594 = vmatpush1.bf16.msra.mxu1 %v2019_v23 }
  0xd4   :  { %554 = vmatprep.subr.bf16.mxu0 %v2021_v24  ;;  %595 = vmatprep.subr.bf16.mxu1 %v2025_v25 }
  0xd7   :  { %555 = vmatpush1.bf16.msra.mxu0 %v2029_v26  ;;  %596 = vmatpush1.bf16.msra.mxu1 %v2031_v27 }
  0xd8   :  { %556 = vmatprep.subr.bf16.mxu0 %v2035_v28  ;;  %597 = vmatprep.subr.bf16.mxu1 %v2037_v29 }
  0xdb   :  { %557 = vmatpush1.bf16.msra.mxu0 %v2041_v30  ;;  %598 = vmatpush1.bf16.msra.mxu1 %v2043_v31 }
  0xdc   :  { %558 = vmatprep.subr.bf16.mxu0 %v2047_v32  ;;  %599 = vmatprep.subr.bf16.mxu1 %v2049_v33 }
  0xdf   :  { %559 = vmatpush1.bf16.msra.mxu0 %v2053_v35  ;;  %600 = vmatpush1.bf16.msra.mxu1 %v2055_v36 }
  0xe0   :  { %681 = vmatprep.subr.bf16.mxu0 %v1965_v4  ;;  %722 = vmatprep.subr.bf16.mxu1 %v1967_v5  ;;  %v211_v5 = vadd.f32 %v207_v58, %v199_v42  ;;  %v212_v42 = vadd.f32 %v208_v53, %v200_v49  ;;  %v2776_v49 = vld [vmem:[#allocation13_spill] sm:$0xff] }
 0x195   :  { %v441_v39 = vpop.f32.mrb[0].mxu0  ;;  %v482_v50 = vpop.f32.mrb[0].mxu1 }
 0x196   :  { %v442_v46 = vadd.f32 %v441_v39, %v210_v48  ;;  %v443_v41 = vpop.f32.mrb[1].mxu0  ;;  %v484_v4 = vpop.f32.mrb[1].mxu1  ;;  %v483_v48 = vadd.f32 %v482_v50, %v212_v42  ;;  %v2777_v42 = vld [vmem:[#allocation11_spill] sm:$0xff] }
 0x197   :  { %v444_v45 = vadd.f32 %v443_v41, %v211_v5  ;;  %v445_v0 = vpop.f32.mrb[2].mxu0  ;;  %v486_v51 = vpop.f32.mrb[2].mxu1  ;;  %v485_v34 = vadd.f32 %v484_v4, %v213_v37 }
 0x198   :  { %1738 = vtanh.f32 %v442_v46  ;;  %v446_v40 = vpop.f32.mrb[3].mxu0  ;;  %v487_v62 = vpop.f32.mrb[3].mxu1  ;;  %v2774_v0 = vmov 2  }
 0x199   :  { %1740 = vtanh.f32 %v444_v45  ;;  %v1571_v45 = vld [vmem:[%s2686_s0 + $0x10] sm:$0xf]  ;;  %1672 = vset.pattern.permute.xlu1 %v2774_v0  ;;  %v509_v40 = vpop.permute.xlu1 %508 }
 0x19a   :  { %1742 = vtanh.f32 %v485_v34  ;;  %794 = vperm.xlu0 %1671, %v1571_v45   ;;  %669 = vperm.xlu1 %1672, %v1570_v3   ;;  %v2775_v34 = vmov 1   ;;  %v511_v53 = vmul.f32 %v509_v40, %v2776_v49  ;;  %v2785_v49 = vld [vmem:[#allocation20_spill] sm:$0xff] }
 0x19b   :  { %1744 = vtanh.f32 %v483_v48  ;;  %v512_v48 = vmul.f32 %v509_v40, %v2777_v42 }
 0x19e   :  { %1675 = vset.pattern.permute.xlu0 %v2763_v43  ;;  %1673 = vset.pattern.permute.xlu1 %v2763_v43 }
 0x19f   :  { %782 = vperm.xlu1 %1673, %v1571_v45  }
 0x1a2   :  { %v1739_v58 = vpop.eup %1738 }
 0x1a3   :  { %v493_v44 = vmul.f32 0.5, %v1739_v58  ;;  %v1741_v60 = vpop.eup %1740  ;;  %1674 = vset.pattern.permute.xlu1 %v2774_v0  ;;  %v521_v58 = vpop.permute.xlu1 %520  ;;  %v2784_v0 = vld [vmem:[#allocation23_spill] sm:$0xff] }
 0x1a4   :  { %v494_v38 = vmul.f32 0.5, %v1741_v60  ;;  %v1743_v5 = vpop.eup %1742  ;;  %806 = vperm.xlu1 %1674, %v1571_v45  }
 0x1a5   :  { %v496_v57 = vadd.f32 0.5, %v493_v44  ;;  %v1745_v62 = vpop.eup %1744  ;;  %v2778_v44 = vld [vmem:[#allocation14_spill] sm:$0xff] }
 0x1a6   :  { %v497_v41 = vadd.f32 0.5, %v494_v38  ;;  %v495_v2 = vmul.f32 0.5, %v1745_v62  ;;  %v514_v60 = vmul.f32 %v509_v40, %v2778_v44  ;;  %v533_v62 = vpop.permute.xlu0 %532 }
 0x1a7   :  { %v500_v51 = vmul.f32 %v1743_v5, %v496_v57  ;;  %v2779_v57 = vld [vmem:[#allocation18_spill] sm:$0xff]  ;;  %v2780_v5 = vld [vmem:[#allocation15_spill] sm:$0xff]  ;;  %v535_v45 = vmul.f32 %v533_v62, %v2770_v54  ;;  %v536_v42 = vmul.f32 %v533_v62, %v2784_v0 }
 0x1a8   :  { %v499_v4 = vmul.f32 %v497_v41, %v2142_v63  ;;  %v498_v59 = vadd.f32 0.5, %v495_v2  ;;  %v2772_v63 = vld [vmem:[#allocation8_spill] sm:$0xff]  ;;  %1676 = vset.pattern.permute.xlu1 %v2775_v34  ;;  %v523_v38 = vmul.f32 %v521_v58, %v2779_v57  ;;  %v515_v41 = vadd.f32 %v511_v53, %v2780_v5  ;;  %v2782_v2 = vld [vmem:[#allocation22_spill] sm:$0xff] }
 0x1a9   :  { %v538_v57 = vmul.f32 %v533_v62, %v2785_v49  ;;  %v513_v53 = vmul.f32 %v509_v40, %v2118_v61 }
 0x1aa   :  { %v2204_v37 = vadd.f32 %v500_v51, %v499_v4  ;;  %v2781_v51 = vld [vmem:[#allocation12_spill] sm:$0xff]  ;;  %v527_v3 = vadd.f32 %v523_v38, %v515_v41 }
 0x1ab   :  { %v524_v4 = vmul.f32 %v521_v58, %v2781_v51  ;;  %v517_v38 = vadd.f32 %v513_v53, %v2131_v1 }
 0x1ac   :  { %1746 = vtanh.f32 %v2204_v37  ;;  %v539_v5 = vadd.f32 %v535_v45, %v527_v3  ;;  %v537_v3 = vmul.f32 %v533_v62, %v2137_v55 }
 0x1b6   :  { %v1747_v39 = vpop.eup %1746 }
 0x1b7   :  { %v503_v50 = vmul.f32 %v1747_v39, %v498_v59  ;;  %v516_v59 = vadd.f32 %v512_v48, %v2782_v2  ;;  %v2783_v39 = vld [vmem:[#allocation19_spill] sm:$0xff] }
 0x1b9   :  { %v543_v46 = vpack.c.bf16 %v503_v50, %v503_v50  ;;  %v526_v50 = vmul.f32 %v521_v58, %v2783_v39  ;;  %v528_v34 = vadd.f32 %v524_v4, %v516_v59 }
 0x1bb   :  { %577 = vmatmul.mubr.bf16.vlgmr.msra.gmra.mrb[4].mxu0 %v543_v46  ;;  %618 = vmatmul.mubr.bf16.vlgmr.msra.gmra.mrb[4].mxu1 %v543_v46  ;;  %v518_v46 = vadd.f32 %v514_v60, %v2769_v47  ;;  %v525_v60 = vmul.f32 %v521_v58, %v2771_v56 }
 0x1bc   :  { %682 = vmatpush1.bf16.msra.mxu0 %v1969_v6  ;;  %723 = vmatpush1.bf16.msra.mxu1 %v1971_v7 }
 0x1bd   :  { %683 = vmatprep.subr.bf16.mxu0 %v1977_v8  ;;  %724 = vmatprep.subr.bf16.mxu1 %v1979_v9  ;;  %v530_v44 = vadd.f32 %v526_v50, %v518_v46  ;;  %v529_v40 = vadd.f32 %v525_v60, %v517_v38  ;;  %v2787_v38 = vld [vmem:[#allocation8_spill] sm:$0xff] }
 0x1be   :  { %713 = vmatprep.mubr.bf16.mxu0 %v2763_v43  ;;  %754 = vmatprep.mubr.bf16.mxu1 %v2763_v43 }
 0x1bf   :  { %v542_v39 = vadd.f32 %v538_v57, %v530_v44 }
 0x1c0   :  { %684 = vmatpush1.bf16.msra.mxu0 %v1981_v10  ;;  %725 = vmatpush1.bf16.msra.mxu1 %v1983_v11 }
 0x1c1   :  { %685 = vmatprep.subr.bf16.mxu0 %v1989_v12  ;;  %726 = vmatprep.subr.bf16.mxu1 %v1991_v13 }
 0x1c4   :  { %686 = vmatpush1.bf16.msra.mxu0 %v1993_v14  ;;  %727 = vmatpush1.bf16.msra.mxu1 %v1995_v15 }
 0x1c5   :  { %687 = vmatprep.subr.bf16.mxu0 %v2001_v16  ;;  %728 = vmatprep.subr.bf16.mxu1 %v2003_v17 }
 0x1c8   :  { %688 = vmatpush1.bf16.msra.mxu0 %v2005_v18  ;;  %729 = vmatpush1.bf16.msra.mxu1 %v2007_v19 }
 0x1c9   :  { %689 = vmatprep.subr.bf16.mxu0 %v2013_v20  ;;  %730 = vmatprep.subr.bf16.mxu1 %v2015_v21 }
 0x1cc   :  { %690 = vmatpush1.bf16.msra.mxu0 %v2017_v22  ;;  %731 = vmatpush1.bf16.msra.mxu1 %v2019_v23 }
 0x1cd   :  { %691 = vmatprep.subr.bf16.mxu0 %v2021_v24  ;;  %732 = vmatprep.subr.bf16.mxu1 %v2025_v25 }
 0x1d0   :  { %692 = vmatpush1.bf16.msra.mxu0 %v2029_v26  ;;  %733 = vmatpush1.bf16.msra.mxu1 %v2031_v27 }
 0x1d1   :  { %693 = vmatprep.subr.bf16.mxu0 %v2035_v28  ;;  %734 = vmatprep.subr.bf16.mxu1 %v2037_v29 }
 0x1d4   :  { %694 = vmatpush1.bf16.msra.mxu0 %v2041_v30  ;;  %735 = vmatpush1.bf16.msra.mxu1 %v2043_v31 }
 0x1d5   :  { %695 = vmatprep.subr.bf16.mxu0 %v2047_v32  ;;  %736 = vmatprep.subr.bf16.mxu1 %v2049_v33 }
 0x1d8   :  { %696 = vmatpush1.bf16.msra.mxu0 %v2053_v35  ;;  %737 = vmatpush1.bf16.msra.mxu1 %v2055_v36 }
 0x1d9   :  { %818 = vmatprep.subr.bf16.mxu0 %v2772_v63  ;;  %859 = vmatprep.subr.bf16.mxu1 %v2773_v52  ;;  %v540_v63 = vadd.f32 %v536_v42, %v528_v34  ;;  %v541_v34 = vadd.f32 %v537_v3, %v529_v40  ;;  %v2791_v3 = vld [vmem:[#allocation14_spill] sm:$0xff] }
 0x28e   :  { %v578_v51 = vpop.f32.mrb[4].mxu0  ;;  %v619_v52 = vpop.f32.mrb[4].mxu1 }
 0x28f   :  { %v579_v48 = vadd.f32 %v578_v51, %v539_v5  ;;  %v580_v2 = vpop.f32.mrb[5].mxu0  ;;  %v621_v36 = vpop.f32.mrb[5].mxu1  ;;  %v620_v42 = vadd.f32 %v619_v52, %v541_v34 }
 0x290   :  { %v581_v41 = vadd.f32 %v580_v2, %v540_v63  ;;  %v582_v4 = vpop.f32.mrb[6].mxu0  ;;  %v623_v59 = vpop.f32.mrb[6].mxu1  ;;  %v622_v50 = vadd.f32 %v621_v36, %v542_v39 }
 0x291   :  { %1748 = vtanh.f32 %v579_v48  ;;  %v583_v46 = vpop.f32.mrb[7].mxu0  ;;  %v624_v49 = vpop.f32.mrb[7].mxu1  ;;  %v2789_v59 = vld [vmem:[#allocation13_spill] sm:$0xff] }
 0x292   :  { %1750 = vtanh.f32 %v581_v41  ;;  %v2788_v41 = vld [vmem:[#allocation9_spill] sm:$0xff]  ;;  %v646_v4 = vpop.permute.xlu1 %645  ;;  %v2790_v46 = vld [vmem:[#allocation11_spill] sm:$0xff] }
 0x293   :  { %1752 = vtanh.f32 %v622_v50  ;;  %v648_v50 = vmul.f32 %v646_v4, %v2789_v59  ;;  %v649_v40 = vmul.f32 %v646_v4, %v2790_v46  ;;  %v651_v34 = vmul.f32 %v646_v4, %v2791_v3  ;;  %v2797_v59 = vld [vmem:[#allocation20_spill] sm:$0xff] }
 0x294   :  { %1754 = vtanh.f32 %v620_v42  ;;  %v658_v42 = vpop.permute.xlu0 %657 }
 0x29b   :  { %v1749_v44 = vpop.eup %1748 }
 0x29c   :  { %v630_v57 = vmul.f32 0.5, %v1749_v44  ;;  %v1751_v5 = vpop.eup %1750  ;;  %v2792_v44 = vld [vmem:[#allocation18_spill] sm:$0xff] }
 0x29d   :  { %v631_v51 = vmul.f32 0.5, %v1751_v5  ;;  %v1753_v63 = vpop.eup %1752  ;;  %v2793_v5 = vld [vmem:[#allocation15_spill] sm:$0xff] }
 0x29e   :  { %v633_v58 = vadd.f32 0.5, %v630_v57  ;;  %v1755_v49 = vpop.eup %1754  ;;  %v660_v57 = vmul.f32 %v658_v42, %v2792_v44 }
 0x29f   :  { %v634_v2 = vadd.f32 0.5, %v631_v51  ;;  %v632_v62 = vmul.f32 0.5, %v1755_v49  ;;  %v2794_v51 = vld [vmem:[#allocation12_spill] sm:$0xff] }
 0x2a0   :  { %v637_v45 = vmul.f32 %v1753_v63, %v633_v58  ;;  %v652_v58 = vadd.f32 %v648_v50, %v2793_v5  ;;  %v661_v63 = vmul.f32 %v658_v42, %v2794_v51  ;;  %v650_v50 = vmul.f32 %v646_v4, %v2118_v61 }
 0x2a1   :  { %v636_v36 = vmul.f32 %v634_v2, %v2204_v37  ;;  %v635_v53 = vadd.f32 0.5, %v632_v62  ;;  %v2786_v37 = vld [vmem:[#allocation10_spill] sm:$0xff]  ;;  %v655_v62 = vadd.f32 %v651_v34, %v2769_v47 }
 0x2a2   :  { %v2795_v2 = vld [vmem:[#allocation22_spill] sm:$0xff]  ;;  %v654_v34 = vadd.f32 %v650_v50, %v2131_v1 }
 0x2a3   :  { %v2269_v39 = vadd.f32 %v637_v45, %v636_v36  ;;  %v653_v45 = vadd.f32 %v649_v40, %v2795_v2  ;;  %v2796_v36 = vld [vmem:[#allocation19_spill] sm:$0xff]  ;;  %v662_v40 = vmul.f32 %v658_v42, %v2771_v56 }
 0x2a4   :  { %v663_v49 = vmul.f32 %v658_v42, %v2796_v36 }
 0x2a5   :  { %1756 = vtanh.f32 %v2269_v39  ;;  %v666_v4 = vadd.f32 %v662_v40, %v654_v34 }
 0x2a6   :  { %v667_v46 = vadd.f32 %v663_v49, %v655_v62 }
 0x2af   :  { %v1757_v48 = vpop.eup %1756 }
 0x2b0   :  { %v640_v52 = vmul.f32 %v1757_v48, %v635_v53  ;;  %v670_v53 = vpop.permute.xlu1 %669  ;;  %v664_v48 = vadd.f32 %v660_v57, %v652_v58 }
 0x2b1   :  { %v673_v3 = vmul.f32 %v670_v53, %v2784_v0  ;;  %v675_v44 = vmul.f32 %v670_v53, %v2797_v59 }
 0x2b2   :  { %v680_v60 = vpack.c.bf16 %v640_v52, %v640_v52  ;;  %v672_v52 = vmul.f32 %v670_v53, %v2770_v54 }
 0x2b4   :  { %714 = vmatmul.mubr.bf16.vlgmr.msra.gmra.mrb[8].mxu0 %v680_v60  ;;  %755 = vmatmul.mubr.bf16.vlgmr.msra.gmra.mrb[8].mxu1 %v680_v60  ;;  %v665_v60 = vadd.f32 %v661_v63, %v653_v45  ;;  %v676_v5 = vadd.f32 %v672_v52, %v664_v48 }
 0x2b5   :  { %819 = vmatpush1.bf16.msra.mxu0 %v1969_v6  ;;  %860 = vmatpush1.bf16.msra.mxu1 %v1971_v7 }
 0x2b6   :  { %820 = vmatprep.subr.bf16.mxu0 %v1977_v8  ;;  %861 = vmatprep.subr.bf16.mxu1 %v1979_v9  ;;  %v677_v51 = vadd.f32 %v673_v3, %v665_v60  ;;  %v674_v3 = vmul.f32 %v670_v53, %v2137_v55 }
 0x2b7   :  { %850 = vmatprep.mubr.bf16.mxu0 %v2763_v43  ;;  %891 = vmatprep.mubr.bf16.mxu1 %v2763_v43 }
 0x2b9   :  { %821 = vmatpush1.bf16.msra.mxu0 %v1981_v10  ;;  %862 = vmatpush1.bf16.msra.mxu1 %v1983_v11 }
 0x2ba   :  { %822 = vmatprep.subr.bf16.mxu0 %v1989_v12  ;;  %863 = vmatprep.subr.bf16.mxu1 %v1991_v13 }
 0x2bd   :  { %823 = vmatpush1.bf16.msra.mxu0 %v1993_v14  ;;  %864 = vmatpush1.bf16.msra.mxu1 %v1995_v15 }
 0x2be   :  { %824 = vmatprep.subr.bf16.mxu0 %v2001_v16  ;;  %865 = vmatprep.subr.bf16.mxu1 %v2003_v17 }
 0x2c1   :  { %825 = vmatpush1.bf16.msra.mxu0 %v2005_v18  ;;  %866 = vmatpush1.bf16.msra.mxu1 %v2007_v19 }
 0x2c2   :  { %826 = vmatprep.subr.bf16.mxu0 %v2013_v20  ;;  %867 = vmatprep.subr.bf16.mxu1 %v2015_v21 }
 0x2c5   :  { %827 = vmatpush1.bf16.msra.mxu0 %v2017_v22  ;;  %868 = vmatpush1.bf16.msra.mxu1 %v2019_v23 }
 0x2c6   :  { %828 = vmatprep.subr.bf16.mxu0 %v2021_v24  ;;  %869 = vmatprep.subr.bf16.mxu1 %v2025_v25 }
 0x2c9   :  { %829 = vmatpush1.bf16.msra.mxu0 %v2029_v26  ;;  %870 = vmatpush1.bf16.msra.mxu1 %v2031_v27 }
 0x2ca   :  { %830 = vmatprep.subr.bf16.mxu0 %v2035_v28  ;;  %871 = vmatprep.subr.bf16.mxu1 %v2037_v29 }
 0x2cd   :  { %831 = vmatpush1.bf16.msra.mxu0 %v2041_v30  ;;  %872 = vmatpush1.bf16.msra.mxu1 %v2043_v31 }
 0x2ce   :  { %832 = vmatprep.subr.bf16.mxu0 %v2047_v32  ;;  %873 = vmatprep.subr.bf16.mxu1 %v2049_v33 }
 0x2d1   :  { %833 = vmatpush1.bf16.msra.mxu0 %v2053_v35  ;;  %874 = vmatpush1.bf16.msra.mxu1 %v2786_v37 }
 0x2d2   :  { %955 = vmatprep.subr.bf16.mxu0 %v2787_v38  ;;  %996 = vmatprep.subr.bf16.mxu1 %v2788_v41  ;;  %v679_v41 = vadd.f32 %v675_v44, %v667_v46  ;;  %v678_v46 = vadd.f32 %v674_v3, %v666_v4 }
 0x387   :  { %v715_v36 = vpop.f32.mrb[8].mxu0  ;;  %v756_v47 = vpop.f32.mrb[8].mxu1 }
 0x388   :  { %v716_v57 = vadd.f32 %v715_v36, %v676_v5  ;;  %v717_v58 = vpop.f32.mrb[9].mxu0  ;;  %v758_v54 = vpop.f32.mrb[9].mxu1  ;;  %v757_v42 = vadd.f32 %v756_v47, %v678_v46 }
 0x389   :  { %v718_v63 = vadd.f32 %v717_v58, %v677_v51  ;;  %v719_v45 = vpop.f32.mrb[10].mxu0  ;;  %v760_v0 = vpop.f32.mrb[10].mxu1  ;;  %v759_v49 = vadd.f32 %v758_v54, %v679_v41 }
 0x38a   :  { %1758 = vtanh.f32 %v716_v57  ;;  %v720_v62 = vpop.f32.mrb[11].mxu0  ;;  %v761_v59 = vpop.f32.mrb[11].mxu1  ;;  %v2811_v57 = vld [vmem:[#allocation20_spill] sm:$0xff] }
 0x38b   :  { %1760 = vtanh.f32 %v718_v63 }
 0x38c   :  { %1762 = vtanh.f32 %v759_v49 }
 0x38d   :  { %1764 = vtanh.f32 %v757_v42 }
 0x394   :  { %v1759_v44 = vpop.eup %1758 }
 0x395   :  { %v767_v48 = vmul.f32 0.5, %v1759_v44  ;;  %v1761_v52 = vpop.eup %1760 }
 0x396   :  { %v768_v36 = vmul.f32 0.5, %v1761_v52  ;;  %v1763_v51 = vpop.eup %1762 }
 0x397   :  { %v770_v5 = vadd.f32 0.5, %v767_v48  ;;  %v1765_v59 = vpop.eup %1764 }
 0x398   :  { %v771_v60 = vadd.f32 0.5, %v768_v36  ;;  %v769_v53 = vmul.f32 0.5, %v1765_v59 }
 0x399   :  { %v774_v0 = vmul.f32 %v1763_v51, %v770_v5 }
 0x39a   :  { %v773_v54 = vmul.f32 %v771_v60, %v2269_v39  ;;  %v772_v50 = vadd.f32 0.5, %v769_v53  ;;  %v2810_v39 = vld [vmem:[#allocation23_spill] sm:$0xff] }
 0x39c   :  { %v2323_v41 = vadd.f32 %v774_v0, %v773_v54 }
 0x39e   :  { %1766 = vtanh.f32 %v2323_v41 }
 0x3a8   :  { %v1767_v40 = vpop.eup %1766 }
 0x3a9   :  { %v777_v47 = vmul.f32 %v1767_v40, %v772_v50 }
 0x3ab   :  { %v817_v34 = vpack.c.bf16 %v777_v47, %v777_v47 }
 0x3ad   :  { %851 = vmatmul.mubr.bf16.vlgmr.msra.gmra.mrb[12].mxu0 %v817_v34  ;;  %892 = vmatmul.mubr.bf16.vlgmr.msra.gmra.mrb[12].mxu1 %v817_v34 }
 0x3ae   :  { %956 = vmatpush1.bf16.msra.mxu0 %v1969_v6  ;;  %997 = vmatpush1.bf16.msra.mxu1 %v1971_v7  ;;  %v2798_v6 = vld [vmem:[#allocation9_spill] sm:$0xff]  ;;  %v1572_v7 = vld [vmem:[%s2686_s0 + $0x14] sm:$0xf] }
 0x3af   :  { %957 = vmatprep.subr.bf16.mxu0 %v1977_v8  ;;  %998 = vmatprep.subr.bf16.mxu1 %v1979_v9  ;;  %v1573_v8 = vld [vmem:[%s2686_s0 + $0x18] sm:$0xf]  ;;  %v2799_v9 = vmov 2  }
 0x3b0   :  { %987 = vmatprep.mubr.bf16.mxu0 %v2763_v43  ;;  %1028 = vmatprep.mubr.bf16.mxu1 %v2763_v43 }
 0x3b1   :  { %931 = vperm.xlu1 %1676, %v1572_v7   ;;  %919 = vperm.xlu0 %1675, %v1572_v7  }
 0x3b2   :  { %958 = vmatpush1.bf16.msra.mxu0 %v1981_v10  ;;  %999 = vmatpush1.bf16.msra.mxu1 %v1983_v11  ;;  %v2800_v10 = vmov 1   ;;  %v783_v11 = vpop.permute.xlu1 %782 }
 0x3b3   :  { %959 = vmatprep.subr.bf16.mxu0 %v1989_v12  ;;  %1000 = vmatprep.subr.bf16.mxu1 %v1991_v13  ;;  %v2801_v12 = vld [vmem:[#allocation13_spill] sm:$0xff]  ;;  %v787_v63 = vmul.f32 %v783_v11, %v2118_v61 }
 0x3b4   :  { %v785_v13 = vmul.f32 %v783_v11, %v2801_v12 }
 0x3b5   :  { %1677 = vset.pattern.permute.xlu1 %v2799_v9  ;;  %1056 = vperm.xlu0 %1675, %v1573_v8   ;;  %v791_v52 = vadd.f32 %v787_v63, %v2131_v1  ;;  %v2419_v63 = vld [vmem:[#allocation2 + $0x48] ss:$16 sps:$4 sm:$0xff]  }
 0x3b6   :  { %960 = vmatpush1.bf16.msra.mxu0 %v1993_v14  ;;  %1001 = vmatpush1.bf16.msra.mxu1 %v1995_v15  ;;  %v2802_v14 = vld [vmem:[#allocation11_spill] sm:$0xff] }
 0x3b7   :  { %961 = vmatprep.subr.bf16.mxu0 %v2001_v16  ;;  %1002 = vmatprep.subr.bf16.mxu1 %v2003_v17  ;;  %v786_v15 = vmul.f32 %v783_v11, %v2802_v14  ;;  %v795_v16 = vpop.permute.xlu0 %794  ;;  %v2803_v17 = vld [vmem:[#allocation14_spill] sm:$0xff] }
 0x3b8   :  { %943 = vperm.xlu1 %1677, %v1572_v7   ;;  %v799_v48 = vmul.f32 %v795_v16, %v2771_v56 }
 0x3b9   :  { %1679 = vset.pattern.permute.xlu0 %v2799_v9 }
 0x3ba   :  { %962 = vmatpush1.bf16.msra.mxu0 %v2005_v18  ;;  %1003 = vmatpush1.bf16.msra.mxu1 %v2007_v19  ;;  %v788_v18 = vmul.f32 %v783_v11, %v2803_v17  ;;  %v2804_v19 = vld [vmem:[#allocation18_spill] sm:$0xff]  ;;  %v803_v59 = vadd.f32 %v799_v48, %v791_v52  ;;  %v2449_v52 = vld [vmem:[#allocation2 + $0xac] ss:$16 sps:$4 sm:$0xff]  }
 0x3bb   :  { %963 = vmatprep.subr.bf16.mxu0 %v2013_v20  ;;  %1004 = vmatprep.subr.bf16.mxu1 %v2015_v21  ;;  %v797_v20 = vmul.f32 %v795_v16, %v2804_v19  ;;  %v2805_v21 = vld [vmem:[#allocation15_spill] sm:$0xff]  ;;  %v2446_v48 = vld [vmem:[#allocation2 + $0xa4] ss:$16 sps:$4 sm:$0xff]  }
 0x3bc   :  { %1678 = vset.pattern.permute.xlu1 %v2800_v10  ;;  %1080 = vperm.xlu0 %1679, %v1573_v8  }
 0x3bd   :  { %1068 = vperm.xlu1 %1678, %v1573_v8  }
 0x3be   :  { %964 = vmatpush1.bf16.msra.mxu0 %v2017_v22  ;;  %1005 = vmatpush1.bf16.msra.mxu1 %v2019_v23  ;;  %v789_v22 = vadd.f32 %v785_v13, %v2805_v21  ;;  %v2806_v23 = vld [vmem:[#allocation12_spill] sm:$0xff] }
 0x3bf   :  { %965 = vmatprep.subr.bf16.mxu0 %v2021_v24  ;;  %1006 = vmatprep.subr.bf16.mxu1 %v2025_v25  ;;  %v798_v24 = vmul.f32 %v795_v16, %v2806_v23  ;;  %v807_v25 = vpop.permute.xlu1 %806 }
 0x3c0   :  { %v812_v58 = vmul.f32 %v807_v25, %v2811_v57  ;;  %v811_v53 = vmul.f32 %v807_v25, %v2137_v55 }
 0x3c1   :  { %1680 = vset.pattern.permute.xlu1 %v2763_v43 }
 0x3c2   :  { %966 = vmatpush1.bf16.msra.mxu0 %v2029_v26  ;;  %1007 = vmatpush1.bf16.msra.mxu1 %v2031_v27  ;;  %v790_v26 = vadd.f32 %v786_v15, %v2795_v2  ;;  %v2807_v27 = vld [vmem:[#allocation19_spill] sm:$0xff]  ;;  %v815_v50 = vadd.f32 %v811_v53, %v803_v59  ;;  %v2470_v59 = vld [vmem:[#allocation2 + $0xe4] ss:$16 sps:$4 sm:$0xff]  }
 0x3c3   :  { %967 = vmatprep.subr.bf16.mxu0 %v2035_v28  ;;  %1008 = vmatprep.subr.bf16.mxu1 %v2037_v29  ;;  %v800_v28 = vmul.f32 %v795_v16, %v2807_v27  ;;  %v2808_v29 = vld [vmem:[#allocation16_spill] sm:$0xff]  ;;  %v2473_v53 = vld [vmem:[#allocation2 + $0xec] ss:$16 sps:$4 sm:$0xff]  }
 0x3c6   :  { %968 = vmatpush1.bf16.msra.mxu0 %v2041_v30  ;;  %1009 = vmatpush1.bf16.msra.mxu1 %v2043_v31  ;;  %v792_v30 = vadd.f32 %v788_v18, %v2808_v29  ;;  %v801_v31 = vadd.f32 %v797_v20, %v789_v22 }
 0x3c7   :  { %969 = vmatprep.subr.bf16.mxu0 %v2047_v32  ;;  %1010 = vmatprep.subr.bf16.mxu1 %v2049_v33  ;;  %v2809_v32 = vld [vmem:[#allocation17_spill] sm:$0xff] }
 0x3c8   :  { %v809_v33 = vmul.f32 %v807_v25, %v2809_v32 }
 0x3ca   :  { %970 = vmatpush1.bf16.msra.mxu0 %v2053_v35  ;;  %1011 = vmatpush1.bf16.msra.mxu1 %v2786_v37  ;;  %v802_v35 = vadd.f32 %v798_v24, %v790_v26  ;;  %v810_v37 = vmul.f32 %v807_v25, %v2810_v39  ;;  %v813_v45 = vadd.f32 %v809_v33, %v801_v31  ;;  %v2399_v31 = vld [vmem:[#allocation2 + $0x2c] ss:$16 sps:$4 sm:$0xff]   ;;  %v2404_v33 = vld [vmem:[#allocation2 + $0x20] ss:$16 sps:$4 sm:$0xff]  }
 0x3cb   :  { %1092 = vmatprep.subr.bf16.mxu0 %v2787_v38  ;;  %1133 = vmatprep.subr.bf16.mxu1 %v2798_v6  ;;  %v804_v38 = vadd.f32 %v800_v28, %v792_v30  ;;  %v2390_v28 = vld [vmem:[#allocation2] ss:$16 sps:$4 sm:$0xff]   ;;  %v2393_v30 = vld [vmem:[#allocation2 + $0x8] ss:$16 sps:$4 sm:$0xff]  }
 0x3cc   :  { %v814_v4 = vadd.f32 %v810_v37, %v802_v35  ;;  %v2407_v35 = vld [vmem:[#allocation2 + $0x28] ss:$16 sps:$4 sm:$0xff]   ;;  %v2410_v37 = vld [vmem:[#allocation2 + $0x44] ss:$16 sps:$4 sm:$0xff]  }
 0x3cd   :  { %v816_v42 = vadd.f32 %v812_v58, %v804_v38  ;;  %v2413_v38 = vld [vmem:[#allocation2 + $0x4c] ss:$16 sps:$4 sm:$0xff]   ;;  %v2416_v58 = vld [vmem:[#allocation2 + $0x40] ss:$16 sps:$4 sm:$0xff]  }
 0x480   :  { %v852_v49 = vpop.f32.mrb[12].mxu0  ;;  %v893_v62 = vpop.f32.mrb[12].mxu1 }
 0x481   :  { %v853_v3 = vadd.f32 %v852_v49, %v813_v45  ;;  %v854_v46 = vpop.f32.mrb[13].mxu0  ;;  %v895_v44 = vpop.f32.mrb[13].mxu1  ;;  %v894_v40 = vadd.f32 %v893_v62, %v815_v50  ;;  %v2422_v45 = vld [vmem:[#allocation2 + $0x64] ss:$16 sps:$4 sm:$0xff]   ;;  %v2425_v49 = vld [vmem:[#allocation2 + $0x6c] ss:$16 sps:$4 sm:$0xff]  }
 0x482   :  { %v855_v5 = vadd.f32 %v854_v46, %v814_v4  ;;  %v856_v36 = vpop.f32.mrb[14].mxu0  ;;  %v897_v51 = vpop.f32.mrb[14].mxu1  ;;  %v896_v60 = vadd.f32 %v895_v44, %v816_v42  ;;  %v2428_v62 = vld [vmem:[#allocation2 + $0x60] ss:$16 sps:$4 sm:$0xff]   ;;  %v2431_v4 = vld [vmem:[#allocation2 + $0x68] ss:$16 sps:$4 sm:$0xff]  }
 0x483   :  { %1768 = vtanh.f32 %v853_v3  ;;  %v857_v0 = vpop.f32.mrb[15].mxu0  ;;  %v898_v54 = vpop.f32.mrb[15].mxu1  ;;  %v2434_v3 = vld [vmem:[#allocation2 + $0x84] ss:$16 sps:$4 sm:$0xff]   ;;  %v2437_v46 = vld [vmem:[#allocation2 + $0x8c] ss:$16 sps:$4 sm:$0xff]  }
 0x484   :  { %1770 = vtanh.f32 %v855_v5  ;;  %v2440_v42 = vld [vmem:[#allocation2 + $0x80] ss:$16 sps:$4 sm:$0xff]   ;;  %v2443_v44 = vld [vmem:[#allocation2 + $0x88] ss:$16 sps:$4 sm:$0xff]   ;;  %v2458_v51 = vld [vmem:[#allocation2 + $0xc4] ss:$16 sps:$4 sm:$0xff]  }
 0x485   :  { %1772 = vtanh.f32 %v896_v60  ;;  %v2452_v5 = vld [vmem:[#allocation2 + $0xa0] ss:$16 sps:$4 sm:$0xff]   ;;  %v2455_v36 = vld [vmem:[#allocation2 + $0xa8] ss:$16 sps:$4 sm:$0xff]   ;;  %v2461_v60 = vld [vmem:[#allocation2 + $0xcc] ss:$16 sps:$4 sm:$0xff]  }
 0x486   :  { %1774 = vtanh.f32 %v894_v40  ;;  %v2464_v0 = vld [vmem:[#allocation2 + $0xc0] ss:$16 sps:$4 sm:$0xff]   ;;  %v2467_v54 = vld [vmem:[#allocation2 + $0xc8] ss:$16 sps:$4 sm:$0xff]  }
 0x487   :  { %v2476_v50 = vld [vmem:[#allocation2 + $0xe0] ss:$16 sps:$4 sm:$0xff]   ;;  %v2479_v40 = vld [vmem:[#allocation2 + $0xe8] ss:$16 sps:$4 sm:$0xff]  }
 0x488   :  { %2812 = vst [vmem:[#allocation21_spill] sm:$0xff] %v2479_v40 }
 0x48d   :  { %v1769_v47 = vpop.eup %1768 }
 0x48e   :  { %v904_v34 = vmul.f32 0.5, %v1769_v47  ;;  %v1771_v6 = vpop.eup %1770  ;;  %v2482_v47 = vld [vmem:[#allocation2 + $0x4] ss:$16 sps:$4 sm:$0xff]  }
 0x48f   :  { %v905_v8 = vmul.f32 0.5, %v1771_v6  ;;  %v1773_v9 = vpop.eup %1772  ;;  %2813 = vst [vmem:[#allocation10_spill] sm:$0xff] %v2482_v47  ;;  %v1574_v6 = vld [vmem:[%s2686_s0 + $0x1c] sm:$0xf] }
 0x490   :  { %v907_v7 = vadd.f32 0.5, %v904_v34  ;;  %v1775_v18 = vpop.eup %1774  ;;  %v2485_v34 = vld [vmem:[#allocation2 + $0xc] ss:$16 sps:$4 sm:$0xff]   ;;  %1193 = vperm.xlu1 %1680, %v1574_v6   ;;  %1217 = vperm.xlu0 %1679, %v1574_v6  }
 0x491   :  { %v908_v11 = vadd.f32 0.5, %v905_v8  ;;  %v906_v20 = vmul.f32 0.5, %v1775_v18  ;;  %2814 = vst [vmem:[#allocation8_spill] sm:$0xff] %v2485_v34 }
 0x492   :  { %v911_v13 = vmul.f32 %v1773_v9, %v907_v7  ;;  %v920_v7 = vpop.permute.xlu0 %919  ;;  %v932_v9 = vpop.permute.xlu1 %931 }
 0x493   :  { %v910_v15 = vmul.f32 %v908_v11, %v2323_v41  ;;  %v909_v22 = vadd.f32 0.5, %v906_v20  ;;  %v2396_v41 = vld [vmem:[#allocation2 + $0x24] ss:$16 sps:$4 sm:$0xff]   ;;  %v922_v8 = vmul.f32 %v920_v7, %v2801_v12  ;;  %v923_v11 = vmul.f32 %v920_v7, %v2802_v14 }
 0x494   :  { %1681 = vset.pattern.permute.xlu1 %v2800_v10  ;;  %v935_v20 = vmul.f32 %v932_v9, %v2806_v23 }
 0x495   :  { %v2387_v16 = vadd.f32 %v911_v13, %v910_v15  ;;  %1205 = vperm.xlu1 %1681, %v1574_v6   ;;  %v925_v13 = vmul.f32 %v920_v7, %v2803_v17  ;;  %v934_v15 = vmul.f32 %v932_v9, %v2804_v19  ;;  %v926_v18 = vadd.f32 %v922_v8, %v2805_v21 }
 0x496   :  { %v924_v8 = vmul.f32 %v920_v7, %v2118_v61 }
 0x497   :  { %1776 = vtanh.f32 %v2387_v16  ;;  %v929_v10 = vadd.f32 %v925_v13, %v2808_v29 }
 0x4a1   :  { %v1777_v24 = vpop.eup %1776 }
 0x4a2   :  { %v914_v25 = vmul.f32 %v1777_v24, %v909_v22  ;;  %v927_v22 = vadd.f32 %v923_v11, %v2795_v2  ;;  %v937_v24 = vmul.f32 %v932_v9, %v2807_v27 }
 0x4a4   :  { %v954_v26 = vpack.c.bf16 %v914_v25, %v914_v25  ;;  %v944_v25 = vpop.permute.xlu1 %943  ;;  %v939_v12 = vadd.f32 %v935_v20, %v927_v22  ;;  %v941_v17 = vadd.f32 %v937_v24, %v929_v10 }
 0x4a5   :  { %v946_v6 = vmul.f32 %v944_v25, %v2809_v32  ;;  %v947_v14 = vmul.f32 %v944_v25, %v2810_v39  ;;  %v949_v19 = vmul.f32 %v944_v25, %v2811_v57 }
 0x4a6   :  { %988 = vmatmul.mubr.bf16.vlgmr.msra.gmra.mrb[16].mxu0 %v954_v26  ;;  %1029 = vmatmul.mubr.bf16.vlgmr.msra.gmra.mrb[16].mxu1 %v954_v26  ;;  %v938_v26 = vadd.f32 %v934_v15, %v926_v18  ;;  %v936_v15 = vmul.f32 %v932_v9, %v2771_v56  ;;  %v928_v18 = vadd.f32 %v924_v8, %v2131_v1 }
 0x4a7   :  { %1093 = vmatpush1.bf16.msra.mxu0 %v2390_v28  ;;  %1134 = vmatpush1.bf16.msra.mxu1 %v2393_v30  ;;  %v951_v11 = vadd.f32 %v947_v14, %v939_v12 }
 0x4a8   :  { %1094 = vmatprep.subr.bf16.mxu0 %v2396_v41  ;;  %1135 = vmatprep.subr.bf16.mxu1 %v2399_v31  ;;  %v950_v21 = vadd.f32 %v946_v6, %v938_v26  ;;  %v940_v7 = vadd.f32 %v936_v15, %v928_v18  ;;  %v948_v26 = vmul.f32 %v944_v25, %v2137_v55  ;;  %v2816_v15 = vld [vmem:[#allocation8_spill] sm:$0xff]  ;;  %v1057_v18 = vpop.permute.xlu0 %1056 }
 0x4a9   :  { %1124 = vmatprep.mubr.bf16.mxu0 %v2763_v43  ;;  %1165 = vmatprep.mubr.bf16.mxu1 %v2763_v43 }
 0x4aa   :  { %v952_v12 = vadd.f32 %v948_v26, %v940_v7  ;;  %v1069_v7 = vpop.permute.xlu1 %1068  ;;  %v2819_v26 = vld [vmem:[#allocation14_spill] sm:$0xff] }
 0x4ab   :  { %1095 = vmatpush1.bf16.msra.mxu0 %v2404_v33  ;;  %1136 = vmatpush1.bf16.msra.mxu1 %v2407_v35 }
 0x4ac   :  { %1096 = vmatprep.subr.bf16.mxu0 %v2410_v37  ;;  %1137 = vmatprep.subr.bf16.mxu1 %v2413_v38 }
 0x4af   :  { %1097 = vmatpush1.bf16.msra.mxu0 %v2416_v58  ;;  %1138 = vmatpush1.bf16.msra.mxu1 %v2419_v63 }
 0x4b0   :  { %1098 = vmatprep.subr.bf16.mxu0 %v2422_v45  ;;  %1139 = vmatprep.subr.bf16.mxu1 %v2425_v49 }
 0x4b3   :  { %1099 = vmatpush1.bf16.msra.mxu0 %v2428_v62  ;;  %1140 = vmatpush1.bf16.msra.mxu1 %v2431_v4 }
 0x4b4   :  { %1100 = vmatprep.subr.bf16.mxu0 %v2434_v3  ;;  %1141 = vmatprep.subr.bf16.mxu1 %v2437_v46 }
 0x4b7   :  { %1101 = vmatpush1.bf16.msra.mxu0 %v2440_v42  ;;  %1142 = vmatpush1.bf16.msra.mxu1 %v2443_v44 }
 0x4b8   :  { %1102 = vmatprep.subr.bf16.mxu0 %v2446_v48  ;;  %1143 = vmatprep.subr.bf16.mxu1 %v2449_v52 }
 0x4bb   :  { %1103 = vmatpush1.bf16.msra.mxu0 %v2452_v5  ;;  %1144 = vmatpush1.bf16.msra.mxu1 %v2455_v36 }
 0x4bc   :  { %1104 = vmatprep.subr.bf16.mxu0 %v2458_v51  ;;  %1145 = vmatprep.subr.bf16.mxu1 %v2461_v60 }
 0x4bf   :  { %1105 = vmatpush1.bf16.msra.mxu0 %v2464_v0  ;;  %1146 = vmatpush1.bf16.msra.mxu1 %v2467_v54 }
 0x4c0   :  { %1106 = vmatprep.subr.bf16.mxu0 %v2470_v59  ;;  %1147 = vmatprep.subr.bf16.mxu1 %v2473_v53 }
 0x4c3   :  { %1107 = vmatpush1.bf16.msra.mxu0 %v2476_v50  ;;  %1148 = vmatpush1.bf16.msra.mxu1 %v2479_v40 }
 0x4c4   :  { %1229 = vmatprep.subr.bf16.mxu0 %v2482_v47  ;;  %1270 = vmatprep.subr.bf16.mxu1 %v2485_v34  ;;  %v953_v47 = vadd.f32 %v949_v19, %v941_v17 }
 0x579   :  { %v989_v23 = vpop.f32.mrb[16].mxu0  ;;  %v1030_v34 = vpop.f32.mrb[16].mxu1 }
 0x57a   :  { %v990_v2 = vadd.f32 %v989_v23, %v950_v21  ;;  %v991_v27 = vpop.f32.mrb[17].mxu0  ;;  %v1032_v13 = vpop.f32.mrb[17].mxu1  ;;  %v1031_v14 = vadd.f32 %v1030_v34, %v952_v12  ;;  %v1062_v12 = vmul.f32 %v1057_v18, %v2819_v26  ;;  %v2826_v26 = vld [vmem:[#allocation20_spill] sm:$0xff] }
 0x57b   :  { %v992_v20 = vadd.f32 %v991_v27, %v951_v11  ;;  %v993_v22 = vpop.f32.mrb[18].mxu0  ;;  %v1034_v39 = vpop.f32.mrb[18].mxu1  ;;  %v1033_v24 = vadd.f32 %v1032_v13, %v953_v47 }
 0x57c   :  { %1778 = vtanh.f32 %v990_v2  ;;  %v994_v10 = vpop.f32.mrb[19].mxu0  ;;  %v1035_v57 = vpop.f32.mrb[19].mxu1 }
 0x57d   :  { %1780 = vtanh.f32 %v992_v20  ;;  %v2817_v20 = vld [vmem:[#allocation13_spill] sm:$0xff] }
 0x57e   :  { %1782 = vtanh.f32 %v1033_v24  ;;  %v1059_v22 = vmul.f32 %v1057_v18, %v2817_v20  ;;  %v2818_v24 = vld [vmem:[#allocation11_spill] sm:$0xff] }
 0x57f   :  { %1784 = vtanh.f32 %v1031_v14  ;;  %v1060_v10 = vmul.f32 %v1057_v18, %v2818_v24  ;;  %v2820_v14 = vld [vmem:[#allocation18_spill] sm:$0xff] }
 0x586   :  { %v1779_v17 = vpop.eup %1778 }
 0x587   :  { %v1041_v19 = vmul.f32 0.5, %v1779_v17  ;;  %v1781_v21 = vpop.eup %1780  ;;  %v1071_v17 = vmul.f32 %v1069_v7, %v2820_v14 }
 0x588   :  { %v1042_v9 = vmul.f32 0.5, %v1781_v21  ;;  %v1783_v27 = vpop.eup %1782 }
 0x589   :  { %v1044_v23 = vadd.f32 0.5, %v1041_v19  ;;  %v1785_v57 = vpop.eup %1784  ;;  %v2821_v19 = vld [vmem:[#allocation15_spill] sm:$0xff] }
 0x58a   :  { %v1045_v6 = vadd.f32 0.5, %v1042_v9  ;;  %v1043_v25 = vmul.f32 0.5, %v1785_v57  ;;  %v1063_v21 = vadd.f32 %v1059_v22, %v2821_v19  ;;  %v1061_v22 = vmul.f32 %v1057_v18, %v2118_v61 }
 0x58b   :  { %v1048_v39 = vmul.f32 %v1783_v27, %v1044_v23  ;;  %v2822_v23 = vld [vmem:[#allocation12_spill] sm:$0xff]  ;;  %v1081_v27 = vpop.permute.xlu0 %1080 }
 0x58c   :  { %v1047_v2 = vmul.f32 %v1045_v6, %v2387_v16  ;;  %v1046_v8 = vadd.f32 0.5, %v1043_v25  ;;  %v2815_v16 = vld [vmem:[#allocation10_spill] sm:$0xff]  ;;  %v1072_v9 = vmul.f32 %v1069_v7, %v2822_v23  ;;  %v1066_v25 = vadd.f32 %v1062_v12, %v2808_v29 }
 0x58d   :  { %v2823_v6 = vld [vmem:[#allocation22_spill] sm:$0xff]  ;;  %v1086_v14 = vmul.f32 %v1081_v27, %v2826_v26  ;;  %v1073_v12 = vmul.f32 %v1069_v7, %v2771_v56 }
 0x58e   :  { %v2509_v47 = vadd.f32 %v1048_v39, %v1047_v2  ;;  %v1064_v39 = vadd.f32 %v1060_v10, %v2823_v6  ;;  %v2824_v2 = vld [vmem:[#allocation19_spill] sm:$0xff] }
 0x58f   :  { %v1074_v57 = vmul.f32 %v1069_v7, %v2824_v2 }
 0x590   :  { %1786 = vtanh.f32 %v2509_v47 }
 0x59a   :  { %v1787_v11 = vpop.eup %1786 }
 0x59b   :  { %v1051_v34 = vmul.f32 %v1787_v11, %v1046_v8  ;;  %v1075_v8 = vadd.f32 %v1071_v17, %v1063_v21  ;;  %v1083_v11 = vmul.f32 %v1081_v27, %v2809_v32  ;;  %v1065_v17 = vadd.f32 %v1061_v22, %v2131_v1 }
 0x59d   :  { %v1091_v13 = vpack.c.bf16 %v1051_v34, %v1051_v34  ;;  %v1076_v34 = vadd.f32 %v1072_v9, %v1064_v39  ;;  %v1087_v19 = vadd.f32 %v1083_v11, %v1075_v8  ;;  %v1077_v18 = vadd.f32 %v1073_v12, %v1065_v17 }
 0x59e   :  { %v1085_v8 = vmul.f32 %v1081_v27, %v2137_v55 }
 0x59f   :  { %1125 = vmatmul.mubr.bf16.vlgmr.msra.gmra.mrb[20].mxu0 %v1091_v13  ;;  %1166 = vmatmul.mubr.bf16.vlgmr.msra.gmra.mrb[20].mxu1 %v1091_v13  ;;  %v2825_v13 = vld [vmem:[#allocation23_spill] sm:$0xff] }
 0x5a0   :  { %1230 = vmatpush1.bf16.msra.mxu0 %v2390_v28  ;;  %1271 = vmatpush1.bf16.msra.mxu1 %v2393_v30 }
 0x5a1   :  { %1231 = vmatprep.subr.bf16.mxu0 %v2396_v41  ;;  %1272 = vmatprep.subr.bf16.mxu1 %v2399_v31 }
 0x5a2   :  { %1261 = vmatprep.mubr.bf16.mxu0 %v2763_v43  ;;  %1302 = vmatprep.mubr.bf16.mxu1 %v2763_v43 }
 0x5a4   :  { %1232 = vmatpush1.bf16.msra.mxu0 %v2404_v33  ;;  %1273 = vmatpush1.bf16.msra.mxu1 %v2407_v35 }
 0x5a5   :  { %1233 = vmatprep.subr.bf16.mxu0 %v2410_v37  ;;  %1274 = vmatprep.subr.bf16.mxu1 %v2413_v38 }
 0x5a8   :  { %1234 = vmatpush1.bf16.msra.mxu0 %v2416_v58  ;;  %1275 = vmatpush1.bf16.msra.mxu1 %v2419_v63 }
 0x5a9   :  { %1235 = vmatprep.subr.bf16.mxu0 %v2422_v45  ;;  %1276 = vmatprep.subr.bf16.mxu1 %v2425_v49 }
 0x5ac   :  { %1236 = vmatpush1.bf16.msra.mxu0 %v2428_v62  ;;  %1277 = vmatpush1.bf16.msra.mxu1 %v2431_v4 }
 0x5ad   :  { %1237 = vmatprep.subr.bf16.mxu0 %v2434_v3  ;;  %1278 = vmatprep.subr.bf16.mxu1 %v2437_v46 }
 0x5b0   :  { %1238 = vmatpush1.bf16.msra.mxu0 %v2440_v42  ;;  %1279 = vmatpush1.bf16.msra.mxu1 %v2443_v44 }
 0x5b1   :  { %1239 = vmatprep.subr.bf16.mxu0 %v2446_v48  ;;  %1280 = vmatprep.subr.bf16.mxu1 %v2449_v52 }
 0x5b4   :  { %1240 = vmatpush1.bf16.msra.mxu0 %v2452_v5  ;;  %1281 = vmatpush1.bf16.msra.mxu1 %v2455_v36 }
 0x5b5   :  { %1241 = vmatprep.subr.bf16.mxu0 %v2458_v51  ;;  %1282 = vmatprep.subr.bf16.mxu1 %v2461_v60 }
 0x5b8   :  { %1242 = vmatpush1.bf16.msra.mxu0 %v2464_v0  ;;  %1283 = vmatpush1.bf16.msra.mxu1 %v2467_v54 }
 0x5b9   :  { %1243 = vmatprep.subr.bf16.mxu0 %v2470_v59  ;;  %1284 = vmatprep.subr.bf16.mxu1 %v2473_v53 }
 0x5bc   :  { %1244 = vmatpush1.bf16.msra.mxu0 %v2476_v50  ;;  %1285 = vmatpush1.bf16.msra.mxu1 %v2479_v40 }
 0x5bd   :  { %1327 = vmatprep.subr.bf16.mxu0 %v2815_v16  ;;  %1368 = vmatprep.subr.bf16.mxu1 %v2816_v15  ;;  %v1084_v16 = vmul.f32 %v1081_v27, %v2825_v13  ;;  %v1078_v15 = vadd.f32 %v1074_v57, %v1066_v25 }
 0x5bf   :  { %v1088_v20 = vadd.f32 %v1084_v16, %v1076_v34  ;;  %v1090_v2 = vadd.f32 %v1086_v14, %v1078_v15 }
 0x672   :  { %v1126_v23 = vpop.f32.mrb[20].mxu0  ;;  %v1167_v24 = vpop.f32.mrb[20].mxu1 }
 0x673   :  { %v1127_v10 = vadd.f32 %v1126_v23, %v1087_v19  ;;  %v1128_v6 = vpop.f32.mrb[21].mxu0  ;;  %v1169_v40 = vpop.f32.mrb[21].mxu1  ;;  %v1089_v19 = vadd.f32 %v1085_v8, %v1077_v18 }
 0x674   :  { %v1129_v21 = vadd.f32 %v1128_v6, %v1088_v20  ;;  %v1130_v9 = vpop.f32.mrb[22].mxu0  ;;  %v1171_v39 = vpop.f32.mrb[22].mxu1  ;;  %v1170_v57 = vadd.f32 %v1169_v40, %v1090_v2 }
 0x675   :  { %1788 = vtanh.f32 %v1127_v10  ;;  %v1131_v25 = vpop.f32.mrb[23].mxu0  ;;  %v1172_v26 = vpop.f32.mrb[23].mxu1  ;;  %v1168_v23 = vadd.f32 %v1167_v24, %v1089_v19 }
 0x676   :  { %1790 = vtanh.f32 %v1129_v21 }
 0x677   :  { %1792 = vtanh.f32 %v1170_v57 }
 0x678   :  { %1794 = vtanh.f32 %v1168_v23 }
 0x67f   :  { %v1789_v14 = vpop.eup %1788 }
 0x680   :  { %v1178_v11 = vmul.f32 0.5, %v1789_v14  ;;  %v1791_v34 = vpop.eup %1790 }
 0x681   :  { %v1179_v16 = vmul.f32 0.5, %v1791_v34  ;;  %v1793_v20 = vpop.eup %1792 }
 0x682   :  { %v1181_v7 = vadd.f32 0.5, %v1178_v11  ;;  %v1795_v26 = vpop.eup %1794 }
 0x683   :  { %v1182_v6 = vadd.f32 0.5, %v1179_v16  ;;  %v1180_v27 = vmul.f32 0.5, %v1795_v26 }
 0x684   :  { %v1185_v15 = vmul.f32 %v1793_v20, %v1181_v7 }
 0x685   :  { %v1184_v40 = vmul.f32 %v1182_v6, %v2509_v47  ;;  %v1183_v22 = vadd.f32 0.5, %v1180_v27 }
 0x687   :  { %v2563_v2 = vadd.f32 %v1185_v15, %v1184_v40 }
 0x689   :  { %1796 = vtanh.f32 %v2563_v2 }
 0x693   :  { %v1797_v10 = vpop.eup %1796 }
 0x694   :  { %v1188_v24 = vmul.f32 %v1797_v10, %v1183_v22 }
 0x696   :  { %v1228_v12 = vpack.c.bf16 %v1188_v24, %v1188_v24 }
 0x698   :  { %1262 = vmatmul.mubr.bf16.vlgmr.msra.gmra.mrb[24].mxu0 %v1228_v12  ;;  %1303 = vmatmul.mubr.bf16.vlgmr.msra.gmra.mrb[24].mxu1 %v1228_v12 }
 0x699   :  { %1328 = vmatpush1.bf16.msra.mxu0 %v2390_v28  ;;  %1369 = vmatpush1.bf16.msra.mxu1 %v2393_v30  ;;  %v1194_v28 = vpop.permute.xlu1 %1193  ;;  %v2828_v30 = vld [vmem:[#allocation13_spill] sm:$0xff] }
 0x69a   :  { %1329 = vmatprep.subr.bf16.mxu0 %v2396_v41  ;;  %1370 = vmatprep.subr.bf16.mxu1 %v2399_v31  ;;  %v1196_v41 = vmul.f32 %v1194_v28, %v2828_v30  ;;  %v2829_v31 = vld [vmem:[#allocation11_spill] sm:$0xff] }
 0x69b   :  { %1359 = vmatprep.mubr.bf16.mxu0 %v2763_v43  ;;  %1400 = vmatprep.mubr.bf16.mxu1 %v2763_v43  ;;  %v2827_v43 = vld [vmem:[#allocation21_spill] sm:$0xff] }
 0x69d   :  { %1330 = vmatpush1.bf16.msra.mxu0 %v2404_v33  ;;  %1371 = vmatpush1.bf16.msra.mxu1 %v2407_v35  ;;  %v1197_v33 = vmul.f32 %v1194_v28, %v2829_v31  ;;  %v1206_v35 = vpop.permute.xlu1 %1205  ;;  %v1424_v31 = vld [vmem:[%s2690_s4] sm:$0xff] }
 0x69e   :  { %1331 = vmatprep.subr.bf16.mxu0 %v2410_v37  ;;  %1372 = vmatprep.subr.bf16.mxu1 %v2413_v38  ;;  %v2830_v37 = vld [vmem:[#allocation14_spill] sm:$0xff]  ;;  %v1210_v18 = vmul.f32 %v1206_v35, %v2771_v56 }
 0x69f   :  { %v1199_v38 = vmul.f32 %v1194_v28, %v2830_v37  ;;  %v1426_v37 = vld [vmem:[%s2690_s4 + $0x10] sm:$0xff] }
 0x6a1   :  { %1332 = vmatpush1.bf16.msra.mxu0 %v2416_v58  ;;  %1373 = vmatpush1.bf16.msra.mxu1 %v2419_v63  ;;  %v2831_v58 = vld [vmem:[#allocation18_spill] sm:$0xff] }
 0x6a2   :  { %1333 = vmatprep.subr.bf16.mxu0 %v2422_v45  ;;  %1374 = vmatprep.subr.bf16.mxu1 %v2425_v49  ;;  %v1208_v63 = vmul.f32 %v1206_v35, %v2831_v58  ;;  %v2832_v45 = vld [vmem:[#allocation15_spill] sm:$0xff] }
 0x6a3   :  { %v1200_v49 = vadd.f32 %v1196_v41, %v2832_v45 }
 0x6a5   :  { %1334 = vmatpush1.bf16.msra.mxu0 %v2428_v62  ;;  %1375 = vmatpush1.bf16.msra.mxu1 %v2431_v4  ;;  %v2833_v62 = vld [vmem:[#allocation12_spill] sm:$0xff] }
 0x6a6   :  { %1335 = vmatprep.subr.bf16.mxu0 %v2434_v3  ;;  %1376 = vmatprep.subr.bf16.mxu1 %v2437_v46  ;;  %v1209_v4 = vmul.f32 %v1206_v35, %v2833_v62  ;;  %v1218_v3 = vpop.permute.xlu0 %1217  ;;  %v2834_v46 = vld [vmem:[#allocation22_spill] sm:$0xff] }
 0x6a9   :  { %1336 = vmatpush1.bf16.msra.mxu0 %v2440_v42  ;;  %1377 = vmatpush1.bf16.msra.mxu1 %v2443_v44  ;;  %v1201_v42 = vadd.f32 %v1197_v33, %v2834_v46  ;;  %v2835_v44 = vld [vmem:[#allocation19_spill] sm:$0xff] }
 0x6aa   :  { %1337 = vmatprep.subr.bf16.mxu0 %v2446_v48  ;;  %1378 = vmatprep.subr.bf16.mxu1 %v2449_v52  ;;  %v1211_v48 = vmul.f32 %v1206_v35, %v2835_v44  ;;  %v1203_v52 = vadd.f32 %v1199_v38, %v2808_v29  ;;  %v1904_v35 = vmov 0.0|0.0   ;;  %v1427_v38 = vld [vmem:[%s2690_s4 + $0x18] sm:$0xff]  ;;  %v1432_v44 = vld [vmem:[%s2690_s4 + $0x40] sm:$0xff] }
 0x6ab   :  { %v1632_v58 = vpack.c.bf16 %v1427_v38, %v1426_v37 }
 0x6ad   :  { %1338 = vmatpush1.bf16.msra.mxu0 %v2452_v5  ;;  %1379 = vmatpush1.bf16.msra.mxu1 %v2455_v36  ;;  %v1220_v5 = vmul.f32 %v1218_v3, %v2809_v32  ;;  %v1212_v36 = vadd.f32 %v1208_v63, %v1200_v49  ;;  %v1428_v63 = vld [vmem:[%s2690_s4 + $0x20] sm:$0xff]  ;;  %v1429_v49 = vld [vmem:[%s2690_s4 + $0x28] sm:$0xff] }
 0x6ae   :  { %1339 = vmatprep.subr.bf16.mxu0 %v2458_v51  ;;  %1380 = vmatprep.subr.bf16.mxu1 %v2461_v60  ;;  %v1221_v51 = vmul.f32 %v1218_v3, %v2825_v13  ;;  %v1213_v60 = vadd.f32 %v1209_v4, %v1201_v42  ;;  %v1635_v62 = vpack.c.bf16 %v1429_v49, %v1428_v63  ;;  %v1430_v4 = vld [vmem:[%s2690_s4 + $0x30] sm:$0xff] }
 0x6b0   :  { %v1225_v21 = vadd.f32 %v1221_v51, %v1213_v60  ;;  %v1436_v51 = vld [vmem:[%s2690_s4 + $0x60] sm:$0xff] }
 0x6b1   :  { %1340 = vmatpush1.bf16.msra.mxu0 %v2464_v0  ;;  %1381 = vmatpush1.bf16.msra.mxu1 %v2467_v54  ;;  %v2836_v0 = vld [vmem:[#allocation20_spill] sm:$0xff] }
 0x6b2   :  { %1341 = vmatprep.subr.bf16.mxu0 %v2470_v59  ;;  %1382 = vmatprep.subr.bf16.mxu1 %v2473_v53  ;;  %v1223_v54 = vmul.f32 %v1218_v3, %v2836_v0  ;;  %v1215_v59 = vadd.f32 %v1211_v48, %v1203_v52  ;;  %v1198_v53 = vmul.f32 %v1194_v28, %v2118_v61  ;;  %v1433_v48 = vld [vmem:[%s2690_s4 + $0x48] sm:$0xff] }
 0x6b3   :  { %v1222_v61 = vmul.f32 %v1218_v3, %v2137_v55  ;;  %v1431_v3 = vld [vmem:[%s2690_s4 + $0x38] sm:$0xff]  ;;  %v1641_v52 = vpack.c.bf16 %v1433_v48, %v1432_v44  ;;  %v1437_v0 = vld [vmem:[%s2690_s4 + $0x68] sm:$0xff] }
 0x6b4   :  { %v1227_v57 = vadd.f32 %v1223_v54, %v1215_v59  ;;  %v1202_v32 = vadd.f32 %v1198_v53, %v2131_v1  ;;  %v1638_v42 = vpack.c.bf16 %v1431_v3, %v1430_v4  ;;  %v1906_v54 = vmov 0.0   ;;  %v1438_v53 = vld [vmem:[%s2690_s4 + $0x70] sm:$0xff] }
 0x6b5   :  { %1342 = vmatpush1.bf16.msra.mxu0 %v2476_v50  ;;  %1383 = vmatpush1.bf16.msra.mxu1 %v2827_v43  ;;  %v1224_v50 = vadd.f32 %v1220_v5, %v1212_v36  ;;  %v1434_v5 = vld [vmem:[%s2690_s4 + $0x50] sm:$0xff]  ;;  %v1435_v36 = vld [vmem:[%s2690_s4 + $0x58] sm:$0xff]  ;;  %v1647_v59 = vpack.c.bf16 %v1437_v0, %v1436_v51 }
 0x6b6   :  { %v1214_v34 = vadd.f32 %v1210_v18, %v1202_v32  ;;  %1628 = vmatprep.subr.bf16.mxu0 %v1904_v35  ;;  %v1644_v60 = vpack.c.bf16 %v1435_v36, %v1434_v5 }
 0x6b8   :  { %v1226_v7 = vadd.f32 %v1222_v61, %v1214_v34 }
 0x76b   :  { %v1263_v47 = vpop.f32.mrb[24].mxu0  ;;  %v1304_v17 = vpop.f32.mrb[24].mxu1 }
 0x76c   :  { %v1264_v9 = vadd.f32 %v1263_v47, %v1224_v50  ;;  %v1265_v39 = vpop.f32.mrb[25].mxu0  ;;  %v1306_v25 = vpop.f32.mrb[25].mxu1  ;;  %v1305_v16 = vadd.f32 %v1304_v17, %v1226_v7  ;;  %v1439_v50 = vld [vmem:[%s2690_s4 + $0x78] sm:$0xff] }
 0x76d   :  { %v1266_v8 = vadd.f32 %v1265_v39, %v1225_v21  ;;  %v1267_v13 = vpop.f32.mrb[26].mxu0  ;;  %v1308_v19 = vpop.f32.mrb[26].mxu1  ;;  %v1307_v23 = vadd.f32 %v1306_v25, %v1227_v57  ;;  %v1650_v47 = vpack.c.bf16 %v1439_v50, %v1438_v53 }
 0x76e   :  { %1798 = vtanh.f32 %v1264_v9  ;;  %v1268_v14 = vpop.f32.mrb[27].mxu0  ;;  %v1309_v11 = vpop.f32.mrb[27].mxu1 }
 0x76f   :  { %1800 = vtanh.f32 %v1266_v8 }
 0x770   :  { %1802 = vtanh.f32 %v1307_v23 }
 0x771   :  { %1804 = vtanh.f32 %v1305_v16 }
 0x778   :  { %v1799_v20 = vpop.eup %1798 }
 0x779   :  { %v1315_v6 = vmul.f32 0.5, %v1799_v20  ;;  %v1801_v15 = vpop.eup %1800 }
 0x77a   :  { %v1316_v40 = vmul.f32 0.5, %v1801_v15  ;;  %v1803_v26 = vpop.eup %1802 }
 0x77b   :  { %v1318_v56 = vadd.f32 0.5, %v1315_v6  ;;  %v1805_v55 = vpop.eup %1804 }
 0x77c   :  { %v1319_v27 = vadd.f32 0.5, %v1316_v40  ;;  %v1317_v12 = vmul.f32 0.5, %v1805_v55 }
 0x77d   :  { %v1322_v22 = vmul.f32 %v1803_v26, %v1318_v56 }
 0x77e   :  { %v1321_v10 = vmul.f32 %v1319_v27, %v2563_v2  ;;  %v1320_v43 = vadd.f32 0.5, %v1317_v12  ;;  %v1425_v2 = vld [vmem:[%s2690_s4 + $0x8] sm:$0xff] }
 0x77f   :  { %v1629_v33 = vpack.c.bf16 %v1425_v2, %v1424_v31 }
 0x780   :  { %v2615_v24 = vadd.f32 %v1322_v22, %v1321_v10 }
 0x782   :  { %1806 = vtanh.f32 %v2615_v24 }
 0x78c   :  { %v1807_v28 = vpop.eup %1806 }
 0x78d   :  { %v1325_v30 = vmul.f32 %v1807_v28, %v1320_v43 }
 0x78f   :  { %v1326_v41 = vpack.c.bf16 %v1325_v30, %v1325_v30 }
 0x791   :  { %1360 = vmatmul.mubr.bf16.vlgmr.msra.gmra.mrb[28].mxu0 %v1326_v41  ;;  %1401 = vmatmul.mubr.bf16.vlgmr.msra.gmra.mrb[28].mxu1 %v1326_v41 }
 0x792   :  { %1630 = vmatpush3.bf16.msra.mxu0 %v1629_v33  ;;  %1625 = vmatprep.mubr.msk.f32.mxu0 %vm1905_vm1, %v1906_v54 }
 0x793   :  { %1631 = vmatprep.subr.bf16.mxu0 %v1904_v35 }
 0x796   :  { %1633 = vmatpush3.bf16.msra.mxu0 %v1632_v58 }
 0x797   :  { %1634 = vmatprep.subr.bf16.mxu0 %v1904_v35 }
 0x79a   :  { %1636 = vmatpush3.bf16.msra.mxu0 %v1635_v62 }
 0x79b   :  { %1637 = vmatprep.subr.bf16.mxu0 %v1904_v35 }
 0x79e   :  { %1639 = vmatpush3.bf16.msra.mxu0 %v1638_v42 }
 0x79f   :  { %1640 = vmatprep.subr.bf16.mxu0 %v1904_v35 }
 0x7a2   :  { %1642 = vmatpush3.bf16.msra.mxu0 %v1641_v52 }
 0x7a3   :  { %1643 = vmatprep.subr.bf16.mxu0 %v1904_v35 }
 0x7a6   :  { %1645 = vmatpush3.bf16.msra.mxu0 %v1644_v60 }
 0x7a7   :  { %1646 = vmatprep.subr.bf16.mxu0 %v1904_v35 }
 0x7aa   :  { %1648 = vmatpush3.bf16.msra.mxu0 %v1647_v59 }
 0x7ab   :  { %1649 = vmatprep.subr.bf16.mxu0 %v1904_v35 }
 0x7ae   :  { %1651 = vmatpush3.bf16.msra.mxu0 %v1650_v47 }
 0x864   :  { %v1361_v17 = vpop.f32.mrb[28].mxu0  ;;  %v1402_v21 = vpop.f32.mrb[28].mxu1 }
 0x865   :  { %v1362_v9 = vadd.f32 %v1361_v17, %v2832_v45  ;;  %v1363_v39 = vpop.f32.mrb[29].mxu0  ;;  %v1404_v57 = vpop.f32.mrb[29].mxu1  ;;  %v1403_v23 = vadd.f32 %v1402_v21, %v2131_v1  ;;  %v1575_v1 = vld [vmem:[%s2691_s5] ss:$0 sm:$0xff] }
 0x866   :  { %v1364_v25 = vadd.f32 %v1363_v39, %v2834_v46  ;;  %v1365_v18 = vpop.f32.mrb[30].mxu0  ;;  %v1406_v32 = vpop.f32.mrb[30].mxu1  ;;  %v1405_v8 = vadd.f32 %v1404_v57, %v2808_v29 }
 0x867   :  { %1808 = vtanh.f32 %v1362_v9  ;;  %v1366_v13 = vpop.f32.mrb[31].mxu0  ;;  %v1407_v19 = vpop.f32.mrb[31].mxu1 }
 0x868   :  { %1810 = vtanh.f32 %v1364_v25 }
 0x869   :  { %1812 = vtanh.f32 %v1405_v8 }
 0x86a   :  { %1814 = vtanh.f32 %v1403_v23 }
 0x871   :  { %v1809_v14 = vpop.eup %1808 }
 0x872   :  { %v1413_v11 = vmul.f32 0.5, %v1809_v14  ;;  %v1811_v61 = vpop.eup %1810 }
 0x873   :  { %v1414_v45 = vmul.f32 0.5, %v1811_v61  ;;  %v1813_v7 = vpop.eup %1812 }
 0x874   :  { %v1416_v34 = vadd.f32 0.5, %v1413_v11  ;;  %v1815_v29 = vpop.eup %1814 }
 0x875   :  { %v1417_v16 = vadd.f32 0.5, %v1414_v45  ;;  %v1415_v15 = vmul.f32 0.5, %v1815_v29 }
 0x876   :  { %v1420_v46 = vmul.f32 %v1813_v7, %v1416_v34 }
 0x877   :  { %v1419_v20 = vmul.f32 %v1417_v16, %v2615_v24  ;;  %v1418_v56 = vadd.f32 0.5, %v1415_v15 }
 0x879   :  { %v1421_v6 = vadd.f32 %v1420_v46, %v1419_v20 }
 0x87b   :  { %1816 = vtanh.f32 %v1421_v6 }
 0x885   :  { %v1817_v40 = vpop.eup %1816 }
 0x886   :  { %v1423_v26 = vmul.f32 %v1817_v40, %v1418_v56 }
 0x888   :  { %1626 = vmatmul.mubr.f32.vlgmr.msra.gmra.mrb[32].mxu0 %v1423_v26 }
 0x95b   :  { %v1513_v27 = vpop.f32.mrb[32].mxu0 }
 0x95c   :  { %v1514_v22 = vadd.f32 %v1575_v1, %v1513_v27  ;;  %v1627_v10 = vpop.f32.mrb[33].mxu0 }
 0x95e   :  { %1518 = vst.msk [vmem:[#allocation5] sm:$0xf] %vm1517_vm2, %v1514_v22 }
 0x95f   :  { %1883 = shalt.err (!%p1880_p12)
}
 0x960   :  { %s1884_s16 = scalar_lea.hbm %s2692_s6, 64 }
 0x961   :  { %p1885_p13 = scmp.ne.s32.totalorder %s2692_s6, %s1884_s16  ;;  %p1888_p0 = scmp.lt.u32.totalorder %s1884_s16, %s2692_s6 }
 0x963   :  { %p1890_p1 = pnand %p1888_p0, %p1885_p13 }
 0x965   :  { %1893 = shalt.err (!%p1890_p1)
}
 0x966   :  { %1528 = dma.vmem_to_hbm [thread:$0]  %s1526_s2, 64, %s2692_s6, [#allocation4]  }
 0x967   :  { %1896 = dma.done.wait [#allocation4], 64  }
 0x968   :  { %1897 = vsyncadd [#allocation4], 4294967232 }
 0x969   :  { %1532 = vsyncpa [#allocation3], 1 }
 0x96a   :  { %1533 = vsyncpa [#allocation4], 1 }

</bundles_post_ra>
